<compile_context>
chip_gen: v5e
topology: v5e:2x2
jax: 0.10.0
libtpu: 0.0.40
codegen_flags: <defaults>
</compile_context>

<pallas_src>
import functools

import jax
import jax.numpy as jnp
from jax.experimental import pallas as pl
from jax.experimental.pallas import tpu as pltpu


CH = 1024  # hidden width fixed by the module


def _round_up(x, m):
    return (x + m - 1) // m * m


_SQRT_2_OVER_PI = 0.7978845608028654


def _gelu_tanh(x):
    # tanh-approx GELU: transcendental goes to the EUP (free bundle slot)
    # instead of the erf f32 polynomial on the VALU.
    return 0.5 * x * (1.0 + jnp.tanh(_SQRT_2_OVER_PI * (x + 0.044715 * x * x * x)))


def pose_regressor_kernel(x_ref, w1_ref, b1_ref, w2_ref, b2_ref, o_ref):
    # x tile cast to bf16 in-kernel (native MXU operand); f32 accumulation.
    xb = x_ref[...].astype(jnp.bfloat16)
    # Hidden layer: (tile_n, D)bf16 @ (D, CH)bf16 -> f32, + (1, CH)f32
    h = jnp.dot(xb, w1_ref[...], preferred_element_type=jnp.float32)
    h = _gelu_tanh(h + b1_ref[...])
    # Output layer: (tile_n, CH)bf16 @ (CH, OUT_PAD)bf16 -> f32, + (1, OUT_PAD)f32
    y = jnp.dot(h.astype(jnp.bfloat16), w2_ref[...],
                preferred_element_type=jnp.float32)
    o_ref[...] = (y + b2_ref[...]).astype(o_ref.dtype)


def _choose_tile_n(n):
    """16-granular row tile: >=2 grid steps when the batch allows, cap 512."""
    n16 = _round_up(max(int(n), 1), 16)
    if n16 <= 16:
        return 16
    return min(512, _round_up((n16 + 1) // 2, 16))


def prepare_params(w1, b1, w2, b2):
    """One-time weight prep (call once, reuse every forward).

    w1: (decoder_dim, CH), b1: (CH,) or (1, CH)
    w2: (CH, output_dim), b2: (output_dim,) or (1, output_dim)
    Returns kernel-ready (bf16 weights, f32 biases, lane-padded output dim).
    """
    d, ch = w1.shape
    out_dim = int(w2.shape[1])
    out_pad = max(_round_up(out_dim, 128), 128)  # lane-dense output slab

    w1b = jnp.asarray(w1, jnp.bfloat16)
    b1f = jnp.asarray(b1, jnp.float32).reshape(1, ch)
    w2f = jnp.asarray(w2, jnp.float32)
    b2f = jnp.asarray(b2, jnp.float32).reshape(1, out_dim)
    if out_pad != out_dim:
        w2f = jnp.pad(w2f, ((0, 0), (0, out_pad - out_dim)))
        b2f = jnp.pad(b2f, ((0, 0), (0, out_pad - out_dim)))
    w2b = w2f.astype(jnp.bfloat16)
    return (w1b, b1f, w2b, b2f, out_dim)


@functools.partial(jax.jit, static_argnames=("out_dim", "tile_n"))
def _pose_regressor_call(x, w1b, b1f, w2b, b2f, *, out_dim, tile_n):
    n, d = x.shape
    ch = w1b.shape[1]
    out_pad = w2b.shape[1]

    y = pl.pallas_call(
        pose_regressor_kernel,
        out_shape=jax.ShapeDtypeStruct((n, out_pad), x.dtype),
        grid_spec=pltpu.PrefetchScalarGridSpec(
            num_scalar_prefetch=0,
            grid=(pl.cdiv(n, tile_n),),
            in_specs=[
                pl.BlockSpec((tile_n, d), lambda i: (i, 0)),     # x tile (ragged last block clipped)
                pl.BlockSpec((d, ch), lambda i: (0, 0)),         # W1 (VMEM resident)
                pl.BlockSpec((1, ch), lambda i: (0, 0)),         # b1
                pl.BlockSpec((ch, out_pad), lambda i: (0, 0)),   # W2 (resident, lane-padded)
                pl.BlockSpec((1, out_pad), lambda i: (0, 0)),    # b2 (lane-padded)
            ],
            out_specs=pl.BlockSpec((tile_n, out_pad), lambda i: (i, 0)),
        ),
        compiler_params=pltpu.CompilerParams(
            dimension_semantics=("parallel",)),
    )(x, w1b, b1f, w2b, b2f)

    return y[:, :out_dim]


def pose_regressor(x, params, *, tile_n=None):
    """x: (N, decoder_dim) -> (N, output_dim), same dtype as x."""
    w1b, b1f, w2b, b2f, out_dim = params
    if tile_n is None:
        tile_n = _choose_tile_n(x.shape[0])
    return _pose_regressor_call(x, w1b, b1f, w2b, b2f,
                                out_dim=out_dim, tile_n=int(tile_n))


# ----------------------------------------------------------------------------
# Parameter init (matches the PyTorch module's _reset_parameters / defaults)
# ----------------------------------------------------------------------------
def xavier_uniform(key, shape, dtype=jnp.float32):
    # nn.init.xavier_uniform_: bound = sqrt(6 / (fan_in + fan_out)).
    fan_in, fan_out = shape[0], shape[1]
    bound = jnp.sqrt(6.0 / (fan_in + fan_out))
    return jax.random.uniform(key, shape, dtype, minval=-bound, maxval=bound)


def make_params(key, decoder_dim, output_dim, ch=CH, dtype=jnp.float32):
    k1, k2, k3, k4 = jax.random.split(key, 4)
    # Store weights as (in, out) so the kernel computes x @ W + b.
    w1 = xavier_uniform(k1, (decoder_dim, ch), dtype)
    w2 = xavier_uniform(k2, (ch, output_dim), dtype)
    # PyTorch Linear bias default init: uniform(-1/sqrt(fan_in), 1/sqrt(fan_in));
    # _reset_parameters only touches p.dim() > 1, so biases keep that default.
    b1 = jax.random.uniform(k3, (ch,), dtype,
                            minval=-1.0 / jnp.sqrt(decoder_dim),
                            maxval=1.0 / jnp.sqrt(decoder_dim))
    b2 = jax.random.uniform(k4, (output_dim,), dtype,
                            minval=-1.0 / jnp.sqrt(ch),
                            maxval=1.0 / jnp.sqrt(ch))
    return w1, b1, w2, b2


# ----------------------------------------------------------------------------
# References
# ----------------------------------------------------------------------------
def reference_exact(x, w1, b1, w2, b2):
    """Pure-f32, exact-erf GELU: matches the PyTorch forward semantics."""
    xf = x.astype(jnp.float32)
    h = xf @ w1.astype(jnp.float32) + b1.reshape(1, -1).astype(jnp.float32)
    h = 0.5 * h * (1.0 + jax.lax.erf(h * jnp.float32(0.7071067811865476)))
    y = h @ w2.astype(jnp.float32) + b2.reshape(1, -1).astype(jnp.float32)
    return y.astype(x.dtype)


def reference_kernel_math(x, w1, b1, w2, b2):
    """Same arithmetic as the kernel (bf16 operands, f32 accum, tanh GELU)."""
    h = jnp.dot(x.astype(jnp.bfloat16), w1.astype(jnp.bfloat16),
                preferred_element_type=jnp.float32) + b1.reshape(1, -1).astype(jnp.float32)
    h = _gelu_tanh(h)
    y = jnp.dot(h.astype(jnp.bfloat16), w2.astype(jnp.bfloat16),
                preferred_element_type=jnp.float32) + b2.reshape(1, -1).astype(jnp.float32)
    return y.astype(x.dtype)


if __name__ == "__main__":
    # Shapes consistent with the module: decoder_dim input features,
    # hidden ch=1024 (fixed by the module), output_dim=4 (orientation quat).
    DECODER_DIM, OUTPUT_DIM = 256, 4
    key = jax.random.PRNGKey(0)
    kx1, kx2, kp = jax.random.split(key, 3)
    w1, b1, w2, b2 = make_params(kp, DECODER_DIM, OUTPUT_DIM)
    params = prepare_params(w1, b1, w2, b2)   # one-time; reused by every call

    # Case 1: tiny batch (single grid step, block rows exceed the array rows).
    x_small = jax.random.normal(kx1, (8, DECODER_DIM), jnp.float32)
    y_small = jax.block_until_ready(pose_regressor(x_small, params))
    assert y_small.shape == (8, OUTPUT_DIM)
    assert jnp.allclose(y_small, reference_kernel_math(x_small, w1, b1, w2, b2),
                        atol=5e-3, rtol=5e-3), "mismatch vs kernel-math ref (N=8)"
    assert jnp.allclose(y_small, reference_exact(x_small, w1, b1, w2, b2),
                        atol=3e-2, rtol=3e-2), "mismatch vs exact ref (N=8)"

    # Case 2: batch exercising the ragged multi-step ("parallel") grid.
    x_big = jax.random.normal(kx2, (300, DECODER_DIM), jnp.float32)
    y_big = jax.block_until_ready(pose_regressor(x_big, params))
    assert y_big.shape == (300, OUTPUT_DIM)
    assert jnp.allclose(y_big, reference_kernel_math(x_big, w1, b1, w2, b2),
                        atol=5e-3, rtol=5e-3), "mismatch vs kernel-math ref (N=300)"
    assert jnp.allclose(y_big, reference_exact(x_big, w1, b1, w2, b2),
                        atol=3e-2, rtol=3e-2), "mismatch vs exact ref (N=300)"

    print("KERNEL_OK")
</pallas_src>

<mosaic_0001>
module attributes {stable_mosaic.version = 11 : i64} {
  func.func @pose_regressor_kernel(%arg0: i32, %arg1: memref<16x256xf32, #tpu.memory_space<vmem>>, %arg2: memref<256x1024xbf16, #tpu.memory_space<vmem>>, %arg3: memref<1x1024xf32, #tpu.memory_space<vmem>>, %arg4: memref<1024x128xbf16, #tpu.memory_space<vmem>>, %arg5: memref<1x128xf32, #tpu.memory_space<vmem>>, %arg6: memref<16x128xf32, #tpu.memory_space<vmem>>) attributes {dimension_semantics = [#tpu.dimension_semantics<parallel>], iteration_bounds = array<i64: 1>, scalar_prefetch = 0 : i64, scratch_operands = 0 : i64, tpu.core_type = #tpu.core_type<tc>, window_params = [{transform_indices = @transform_0, window_bounds = array<i64: 16, 256>}, {pipeline_mode = #tpu.pipeline_mode<synchronous>, transform_indices = @transform_1, window_bounds = array<i64: 256, 1024>}, {pipeline_mode = #tpu.pipeline_mode<synchronous>, transform_indices = @transform_2, window_bounds = array<i64: 1, 1024>}, {pipeline_mode = #tpu.pipeline_mode<synchronous>, transform_indices = @transform_3, window_bounds = array<i64: 1024, 128>}, {pipeline_mode = #tpu.pipeline_mode<synchronous>, transform_indices = @transform_4, window_bounds = array<i64: 1, 128>}, {transform_indices = @transform_5, window_bounds = array<i64: 16, 128>}]} {
    %c0 = arith.constant 0 : index
    %c0_0 = arith.constant 0 : index
    %0 = vector.load %arg1[%c0, %c0_0] : memref<16x256xf32, #tpu.memory_space<vmem>>, vector<16x256xf32>
    %1 = arith.truncf %0 : vector<16x256xf32> to vector<16x256xbf16>
    %c0_1 = arith.constant 0 : index
    %c0_2 = arith.constant 0 : index
    %2 = vector.load %arg2[%c0_1, %c0_2] : memref<256x1024xbf16, #tpu.memory_space<vmem>>, vector<256x1024xbf16>
    %cst = arith.constant dense<0.000000e+00> : vector<16x1024xf32>
    %3 = tpu.matmul %1, %2, %cst {dimension_numbers = #tpu.dot_dimension_numbers<[1], [0], [0], [1], [0, 0, 1, 1], [], []>} : vector<16x256xbf16>, vector<256x1024xbf16>, vector<16x1024xf32> -> vector<16x1024xf32>
    %c0_3 = arith.constant 0 : index
    %c0_4 = arith.constant 0 : index
    %4 = vector.load %arg3[%c0_3, %c0_4] : memref<1x1024xf32, #tpu.memory_space<vmem>>, vector<1x1024xf32>
    %5 = vector.broadcast %4 : vector<1x1024xf32> to vector<16x1024xf32>
    %6 = arith.addf %3, %5 : vector<16x1024xf32>
    %cst_5 = arith.constant 5.000000e-01 : f32
    %7 = vector.broadcast %cst_5 : f32 to vector<16x1024xf32>
    %8 = arith.mulf %7, %6 : vector<16x1024xf32>
    %cst_6 = arith.constant 4.471500e-02 : f32
    %9 = vector.broadcast %cst_6 : f32 to vector<16x1024xf32>
    %10 = arith.mulf %9, %6 : vector<16x1024xf32>
    %11 = arith.mulf %10, %6 : vector<16x1024xf32>
    %12 = arith.mulf %11, %6 : vector<16x1024xf32>
    %13 = arith.addf %6, %12 : vector<16x1024xf32>
    %cst_7 = arith.constant 0.797884583 : f32
    %14 = vector.broadcast %cst_7 : f32 to vector<16x1024xf32>
    %15 = arith.mulf %14, %13 : vector<16x1024xf32>
    %16 = math.tanh %15 : vector<16x1024xf32>
    %cst_8 = arith.constant 1.000000e+00 : f32
    %17 = vector.broadcast %cst_8 : f32 to vector<16x1024xf32>
    %18 = arith.addf %17, %16 : vector<16x1024xf32>
    %19 = arith.mulf %8, %18 : vector<16x1024xf32>
    %20 = arith.truncf %19 : vector<16x1024xf32> to vector<16x1024xbf16>
    %c0_9 = arith.constant 0 : index
    %c0_10 = arith.constant 0 : index
    %21 = vector.load %arg4[%c0_9, %c0_10] : memref<1024x128xbf16, #tpu.memory_space<vmem>>, vector<1024x128xbf16>
    %cst_11 = arith.constant dense<0.000000e+00> : vector<16x128xf32>
    %22 = tpu.matmul %20, %21, %cst_11 {dimension_numbers = #tpu.dot_dimension_numbers<[1], [0], [0], [1], [0, 0, 1, 1], [], []>} : vector<16x1024xbf16>, vector<1024x128xbf16>, vector<16x128xf32> -> vector<16x128xf32>
    %c0_12 = arith.constant 0 : index
    %c0_13 = arith.constant 0 : index
    %23 = vector.load %arg5[%c0_12, %c0_13] : memref<1x128xf32, #tpu.memory_space<vmem>>, vector<1x128xf32>
    %24 = vector.broadcast %23 : vector<1x128xf32> to vector<16x128xf32>
    %25 = arith.addf %22, %24 : vector<16x128xf32>
    %c0_14 = arith.constant 0 : index
    %c0_15 = arith.constant 0 : index
    %26 = vector.load %arg6[%c0_14, %c0_15] : memref<16x128xf32, #tpu.memory_space<vmem>>, vector<16x128xf32>
    tpu.vector_store %arg6[%c0_14, %c0_15], %25 {strides = array<i32>} : memref<16x128xf32, #tpu.memory_space<vmem>>, vector<16x128xf32>,
    return
  }
  func.func @transform_0(%arg0: i32) -> (i32, i32) {
    %c0_i32 = arith.constant 0 : i32
    %c0_i32_0 = arith.constant 0 : i32
    return %arg0, %c0_i32 : i32, i32
  }
  func.func @transform_1(%arg0: i32) -> (i32, i32) {
    %c0_i32 = arith.constant 0 : i32
    %c0_i32_0 = arith.constant 0 : i32
    %c0_i32_1 = arith.constant 0 : i32
    return %c0_i32, %c0_i32_0 : i32, i32
  }
  func.func @transform_2(%arg0: i32) -> (i32, i32) {
    %c0_i32 = arith.constant 0 : i32
    %c0_i32_0 = arith.constant 0 : i32
    %c0_i32_1 = arith.constant 0 : i32
    return %c0_i32, %c0_i32_0 : i32, i32
  }
  func.func @transform_3(%arg0: i32) -> (i32, i32) {
    %c0_i32 = arith.constant 0 : i32
    %c0_i32_0 = arith.constant 0 : i32
    %c0_i32_1 = arith.constant 0 : i32
    return %c0_i32, %c0_i32_0 : i32, i32
  }
  func.func @transform_4(%arg0: i32) -> (i32, i32) {
    %c0_i32 = arith.constant 0 : i32
    %c0_i32_0 = arith.constant 0 : i32
    %c0_i32_1 = arith.constant 0 : i32
    return %c0_i32, %c0_i32_0 : i32, i32
  }
  func.func @transform_5(%arg0: i32) -> (i32, i32) {
    %c0_i32 = arith.constant 0 : i32
    %c0_i32_0 = arith.constant 0 : i32
    return %arg0, %c0_i32 : i32, i32
  }
}

</mosaic_0001>

<bundles_post_ra>
// kernel: _pose_regressor_call.1
= control target key start
LH: loop header
LB: loop body
LE: loop exit
PB: predicated region body
PF: predicated region fallthrough
CT: control target
= control target key end

     0   :  { %10 = vsyncpa [#allocation3], 0  ;;  %s3158_s0 = inlined_call_operand.hbm [shape: f32[8,256], index: 0, kind: input, shape index: {}]   ;;  %s3159_s1 = inlined_call_operand.hbm [shape: bf16[256,1024], index: 1, kind: input, shape index: {}]   ;;  %s3160_s2 = inlined_call_operand.hbm [shape: f32[1,1024], index: 2, kind: input, shape index: {}]   ;;  %s3161_s3 = inlined_call_operand.hbm [shape: bf16[1024,128], index: 3, kind: input, shape index: {}]   ;;  %s3162_s4 = inlined_call_operand.vmem [shape: f32[1,128], index: 4, kind: input, shape index: {}]   ;;  %s3163_s5 = inlined_call_operand.vmem [shape: f32[8,128], index: 5, kind: output, shape index: {}]  }
   0x1   :  { %11 = vsyncpa [#allocation5], 0 }
   0x2   :  { %12 = vsyncpa [#allocation8], 0  ;;  %s30_s20 = sshll.u32 %s3159_s1, 4  ;;  %s31_s20 = int_to_ptr.hbm [resolvable:$true] %s30_s20 }
   0x3   :  { %16 = vsyncadd [#allocation3], 256  ;;  %s3028_s21 = smov [#allocation4]   ;;  %s17_s25 = sshll.u32 %s3158_s0, 4  ;;  %s18_s25 = int_to_ptr.hbm [resolvable:$true] %s17_s25 }
   0x4   :  { %s32_s22 = sshll.u32 %s3028_s21, 4  ;;  %s3029_s26 = smov 512   ;;  %s33_s22 = int_to_ptr.vmem [resolvable:$true] %s32_s22 }
   0x5   :  { %s3030_s27 = smov 32   ;;  %s3031_s28 = smov [#allocation2]  }
   0x6   :  { %38 = dma.hbm_to_vmem [thread:$0]  %s31_s20, 16384, %s33_s22, [#allocation5], %s3029_s26, %s3029_s26, %s3030_s27  }
   0x7   :  { %s19_s29 = sshll.u32 %s3031_s28, 4  ;;  %s3032_s30 = smov 256   ;;  %s20_s29 = int_to_ptr.vmem [resolvable:$true] %s19_s29 }
   0x8   :  { %s3033_s6 = smov 16   ;;  %s44_s8 = sshll.u32 %s3160_s2, 4  ;;  %s45_s8 = int_to_ptr.hbm [resolvable:$true] %s44_s8 }
   0x9   :  { %25 = dma.hbm_to_vmem [thread:$0]  %s18_s25, 256, %s20_s29, [#allocation3], %s3032_s30, %s3032_s30, %s3033_s6  }
   0xa   :  { %s3034_s9 = smov [#allocation6]   ;;  %s54_s12 = sshll.u32 %s3161_s3, 4  ;;  %s55_s12 = int_to_ptr.hbm [resolvable:$true] %s54_s12 }
   0xb   :  { %s46_s10 = sshll.u32 %s3034_s9, 4  ;;  %s3035_s13 = smov [#allocation7]   ;;  %s47_s10 = int_to_ptr.vmem [resolvable:$true] %s46_s10 }
   0xc   :  { %49 = dma.hbm_to_vmem [thread:$0]  %s45_s8, 128, %s47_s10, [#allocation5]  }
   0xd   :  { %s56_s14 = sshll.u32 %s3035_s13, 4  ;;  %s3036_s15 = smov 64   ;;  %s57_s14 = int_to_ptr.vmem [resolvable:$true] %s56_s14 }
   0xe   :  { %s3037_s16 = smov 4  }
   0xf   :  { %62 = dma.hbm_to_vmem [thread:$0]  %s55_s12, 8192, %s57_s14, [#allocation8], %s3036_s15, %s3036_s15, %s3037_s16  }
  0x10   :  { %3022 = dma.done.wait [#allocation3], 512  }
  0x11   :  { %3023 = vsyncadd [#allocation3], 4294966784 }
  0x12   :  { %3024 = dma.done.wait [#allocation5], 16512  }
  0x13   :  { %3025 = vsyncadd [#allocation5], 4294950784 }
  0x14   :  { %3026 = dma.done.wait [#allocation8], 8192  }
  0x15   :  { %3027 = vsyncadd [#allocation8], 4294959104  ;;  %v2149_v0 = vld [vmem:[#allocation4 + $0x1c0] sm:$0xf]  ;;  %v2747_v5 = vld [vmem:[#allocation4 + $0x1c4] sm:$0xf] }
  0x16   :  { %v2751_v1 = vld [vmem:[#allocation4 + $0x1dc] sm:$0xf0]  ;;  %v2151_v6 = vld [vmem:[#allocation4 + $0x1e0] sm:$0xf0] }
  0x17   :  { %v2405_v2 = vld [vmem:[#allocation4 + $0x3c0] sm:$0xf]  ;;  %v2150_v3 = vor.u32 %v2751_v1, %v2149_v0  ;;  %v2154_v8 = vor.u32 %v2747_v5, %v2151_v6  ;;  %v2811_v9 = vld [vmem:[#allocation4 + $0x3c4] sm:$0xf] }
  0x18   :  { %v2815_v4 = vld [vmem:[#allocation4 + $0x3dc] sm:$0xf0]  ;;  %v2407_v10 = vld [vmem:[#allocation4 + $0x3e0] sm:$0xf0] }
  0x19   :  { %v2406_v7 = vor.u32 %v2815_v4, %v2405_v2  ;;  %v2117_v11 = vld [vmem:[#allocation4 + $0x180] sm:$0xf]  ;;  %873 = vmatpush.bf16.msra.mxu0 %v2150_v3  ;;  %v2410_v12 = vor.u32 %v2811_v9, %v2407_v10  ;;  %901 = vmatpush.bf16.msra.mxu2 %v2154_v8  ;;  %v2739_v18 = vld [vmem:[#allocation4 + $0x184] sm:$0xf] }
  0x1a   :  { %v2743_v13 = vld [vmem:[#allocation4 + $0x19c] sm:$0xf0]  ;;  %v2119_v19 = vld [vmem:[#allocation4 + $0x1a0] sm:$0xf0] }
  0x1b   :  { %v2373_v14 = vld [vmem:[#allocation4 + $0x380] sm:$0xf]  ;;  %887 = vmatpush.bf16.msra.mxu1 %v2406_v7  ;;  %v2118_v16 = vor.u32 %v2743_v13, %v2117_v11  ;;  %v2803_v20 = vld [vmem:[#allocation4 + $0x384] sm:$0xf]  ;;  %915 = vmatpush.bf16.msra.mxu3 %v2410_v12  ;;  %v2122_v21 = vor.u32 %v2739_v18, %v2119_v19 }
  0x1c   :  { %v2807_v15 = vld [vmem:[#allocation4 + $0x39c] sm:$0xf0]  ;;  %v2375_v22 = vld [vmem:[#allocation4 + $0x3a0] sm:$0xf0] }
  0x1d   :  { %v2374_v17 = vor.u32 %v2807_v15, %v2373_v14  ;;  %v2085_v23 = vld [vmem:[#allocation4 + $0x140] sm:$0xf]  ;;  %v2378_v25 = vor.u32 %v2803_v20, %v2375_v22  ;;  %v2731_v28 = vld [vmem:[#allocation4 + $0x144] sm:$0xf]  ;;  %874 = vmatpush.bf16.msra.mxu0 %v2118_v16  ;;  %902 = vmatpush.bf16.msra.mxu2 %v2122_v21 }
  0x1e   :  { %v2735_v24 = vld [vmem:[#allocation4 + $0x15c] sm:$0xf0]  ;;  %v2087_v30 = vld [vmem:[#allocation4 + $0x160] sm:$0xf0] }
  0x1f   :  { %v2341_v26 = vld [vmem:[#allocation4 + $0x340] sm:$0xf]  ;;  %v2086_v29 = vor.u32 %v2735_v24, %v2085_v23  ;;  %v2795_v31 = vld [vmem:[#allocation4 + $0x344] sm:$0xf]  ;;  %888 = vmatpush.bf16.msra.mxu1 %v2374_v17  ;;  %v2090_v34 = vor.u32 %v2731_v28, %v2087_v30  ;;  %916 = vmatpush.bf16.msra.mxu3 %v2378_v25  ;;  %v2157_v28 = vld [vmem:[#allocation4 + $0x1c8] sm:$0xf] }
  0x20   :  { %v2799_v27 = vld [vmem:[#allocation4 + $0x35c] sm:$0xf0]  ;;  %v2343_v32 = vld [vmem:[#allocation4 + $0x360] sm:$0xf0]  ;;  %v2413_v30 = vld [vmem:[#allocation4 + $0x3c8] sm:$0xf] }
  0x21   :  { %v2342_v33 = vor.u32 %v2799_v27, %v2341_v26  ;;  %v2053_v35 = vld [vmem:[#allocation4 + $0x100] sm:$0xf]  ;;  %v2346_v38 = vor.u32 %v2795_v31, %v2343_v32  ;;  %v2723_v40 = vld [vmem:[#allocation4 + $0x104] sm:$0xf]  ;;  %875 = vmatpush.bf16.msra.mxu0 %v2086_v29  ;;  %903 = vmatpush.bf16.msra.mxu2 %v2090_v34  ;;  %v2752_v29 = vld [vmem:[#allocation4 + $0x1e4] sm:$0xf0] }
  0x22   :  { %v2727_v36 = vld [vmem:[#allocation4 + $0x11c] sm:$0xf0]  ;;  %v2055_v41 = vld [vmem:[#allocation4 + $0x120] sm:$0xf0]  ;;  %v2816_v31 = vld [vmem:[#allocation4 + $0x3e4] sm:$0xf0] }
  0x23   :  { %v2309_v37 = vld [vmem:[#allocation4 + $0x300] sm:$0xf]  ;;  %v2787_v42 = vld [vmem:[#allocation4 + $0x304] sm:$0xf]  ;;  %v2054_v44 = vor.u32 %v2727_v36, %v2053_v35  ;;  %889 = vmatpush.bf16.msra.mxu1 %v2342_v33  ;;  %v2058_v46 = vor.u32 %v2723_v40, %v2055_v41  ;;  %917 = vmatpush.bf16.msra.mxu3 %v2346_v38  ;;  %v2748_v33 = vld [vmem:[#allocation4 + $0x1cc] sm:$0xf] }
  0x24   :  { %v2791_v39 = vld [vmem:[#allocation4 + $0x31c] sm:$0xf0]  ;;  %v2311_v43 = vld [vmem:[#allocation4 + $0x320] sm:$0xf0]  ;;  %v2159_v34 = vld [vmem:[#allocation4 + $0x1e8] sm:$0xf0] }
  0x25   :  { %v2310_v45 = vor.u32 %v2791_v39, %v2309_v37  ;;  %v2021_v47 = vld [vmem:[#allocation4 + $0xc0] sm:$0xf]  ;;  %v2314_v50 = vor.u32 %v2787_v42, %v2311_v43  ;;  %v2715_v52 = vld [vmem:[#allocation4 + $0xc4] sm:$0xf]  ;;  %876 = vmatpush.bf16.msra.mxu0 %v2054_v44  ;;  %904 = vmatpush.bf16.msra.mxu2 %v2058_v46  ;;  %v2812_v35 = vld [vmem:[#allocation4 + $0x3cc] sm:$0xf]  ;;  %v2158_v42 = vor.u32 %v2752_v29, %v2157_v28 }
  0x26   :  { %v2719_v48 = vld [vmem:[#allocation4 + $0xdc] sm:$0xf0]  ;;  %v2023_v53 = vld [vmem:[#allocation4 + $0xe0] sm:$0xf0]  ;;  %v2415_v38 = vld [vmem:[#allocation4 + $0x3e8] sm:$0xf0]  ;;  %v2162_v46 = vor.u32 %v2748_v33, %v2159_v34 }
  0x27   :  { %v2277_v49 = vld [vmem:[#allocation4 + $0x2c0] sm:$0xf]  ;;  %v2779_v54 = vld [vmem:[#allocation4 + $0x2c4] sm:$0xf]  ;;  %v2022_v56 = vor.u32 %v2719_v48, %v2021_v47  ;;  %890 = vmatpush.bf16.msra.mxu1 %v2310_v45  ;;  %v2026_v58 = vor.u32 %v2715_v52, %v2023_v53  ;;  %918 = vmatpush.bf16.msra.mxu3 %v2314_v50  ;;  %v83_v40 = vld [vmem:[#allocation2 + $0x10] sm:$0xff]  ;;  %v2414_v45 = vor.u32 %v2816_v31, %v2413_v30 }
  0x28   :  { %v2783_v51 = vld [vmem:[#allocation4 + $0x2dc] sm:$0xf0]  ;;  %v2279_v55 = vld [vmem:[#allocation4 + $0x2e0] sm:$0xf0]  ;;  %v82_v43 = vld [vmem:[#allocation2 + $0x8] sm:$0xff]  ;;  %v2418_v50 = vor.u32 %v2812_v35, %v2415_v38 }
  0x29   :  { %v2278_v57 = vor.u32 %v2783_v51, %v2277_v49  ;;  %v1989_v59 = vld [vmem:[#allocation4 + $0x80] sm:$0xf]  ;;  %v2282_v62 = vor.u32 %v2779_v54, %v2279_v55  ;;  %v2707_v0 = vld [vmem:[#allocation4 + $0x84] sm:$0xf]  ;;  %877 = vmatpush.bf16.msra.mxu0 %v2022_v56  ;;  %905 = vmatpush.bf16.msra.mxu2 %v2026_v58  ;;  %v84_v44 = vld [vmem:[#allocation2 + $0x18] sm:$0xff] }
  0x2a   :  { %v2711_v60 = vld [vmem:[#allocation4 + $0x9c] sm:$0xf0]  ;;  %v1991_v1 = vld [vmem:[#allocation4 + $0xa0] sm:$0xf0]  ;;  %v2125_v47 = vld [vmem:[#allocation4 + $0x188] sm:$0xf]  ;;  %v3082_v55 = vpack.c.bf16 %v84_v44, %v82_v43 }
  0x2b   :  { %v2245_v61 = vld [vmem:[#allocation4 + $0x280] sm:$0xf]  ;;  %v2771_v2 = vld [vmem:[#allocation4 + $0x284] sm:$0xf]  ;;  %v1990_v4 = vor.u32 %v2711_v60, %v1989_v59  ;;  %891 = vmatpush.bf16.msra.mxu1 %v2278_v57  ;;  %v1994_v6 = vor.u32 %v2707_v0, %v1991_v1  ;;  %919 = vmatpush.bf16.msra.mxu3 %v2282_v62  ;;  %v2744_v48 = vld [vmem:[#allocation4 + $0x1a4] sm:$0xf0] }
  0x2c   :  { %v2775_v63 = vld [vmem:[#allocation4 + $0x29c] sm:$0xf0]  ;;  %v2247_v3 = vld [vmem:[#allocation4 + $0x2a0] sm:$0xf0]  ;;  %v2381_v49 = vld [vmem:[#allocation4 + $0x388] sm:$0xf]  ;;  %v2126_v58 = vor.u32 %v2744_v48, %v2125_v47 }
  0x2d   :  { %v2246_v5 = vor.u32 %v2775_v63, %v2245_v61  ;;  %v1957_v7 = vld [vmem:[#allocation4 + $0x40] sm:$0xf]  ;;  %v2250_v10 = vor.u32 %v2771_v2, %v2247_v3  ;;  %v2699_v12 = vld [vmem:[#allocation4 + $0x44] sm:$0xf]  ;;  %878 = vmatpush.bf16.msra.mxu0 %v1990_v4  ;;  %906 = vmatpush.bf16.msra.mxu2 %v1994_v6  ;;  %v2808_v52 = vld [vmem:[#allocation4 + $0x3a4] sm:$0xf0] }
  0x2e   :  { %v2703_v8 = vld [vmem:[#allocation4 + $0x5c] sm:$0xf0]  ;;  %v1959_v13 = vld [vmem:[#allocation4 + $0x60] sm:$0xf0]  ;;  %v2740_v53 = vld [vmem:[#allocation4 + $0x18c] sm:$0xf]  ;;  %v2382_v59 = vor.u32 %v2808_v52, %v2381_v49 }
  0x2f   :  { %v2213_v9 = vld [vmem:[#allocation4 + $0x240] sm:$0xf]  ;;  %v2763_v14 = vld [vmem:[#allocation4 + $0x244] sm:$0xf]  ;;  %v1958_v16 = vor.u32 %v2703_v8, %v1957_v7  ;;  %892 = vmatpush.bf16.msra.mxu1 %v2246_v5  ;;  %v1962_v21 = vor.u32 %v2699_v12, %v1959_v13  ;;  %920 = vmatpush.bf16.msra.mxu3 %v2250_v10  ;;  %v2127_v54 = vld [vmem:[#allocation4 + $0x1a8] sm:$0xf0] }
  0x30   :  { %v2767_v11 = vld [vmem:[#allocation4 + $0x25c] sm:$0xf0]  ;;  %v2215_v15 = vld [vmem:[#allocation4 + $0x260] sm:$0xf0]  ;;  %v2804_v56 = vld [vmem:[#allocation4 + $0x38c] sm:$0xf]  ;;  %v2130_v60 = vor.u32 %v2740_v53, %v2127_v54 }
  0x31   :  { %v1925_v17 = vld [vmem:[#allocation4] sm:$0xf]  ;;  %v2214_v20 = vor.u32 %v2767_v11, %v2213_v9  ;;  %v2691_v23 = vld [vmem:[#allocation4 + $0x4] sm:$0xf]  ;;  %v2218_v25 = vor.u32 %v2763_v14, %v2215_v15  ;;  %879 = vmatpush.bf16.msra.mxu0 %v1958_v16  ;;  %907 = vmatpush.bf16.msra.mxu2 %v1962_v21  ;;  %v2383_v57 = vld [vmem:[#allocation4 + $0x3a8] sm:$0xf0] }
  0x32   :  { %v2695_v18 = vld [vmem:[#allocation4 + $0x1c] sm:$0xf0]  ;;  %v1927_v24 = vld [vmem:[#allocation4 + $0x20] sm:$0xf0]  ;;  %v2093_v61 = vld [vmem:[#allocation4 + $0x148] sm:$0xf]  ;;  %v2386_v0 = vor.u32 %v2804_v56, %v2383_v57 }
  0x33   :  { %v2181_v19 = vld [vmem:[#allocation4 + $0x200] sm:$0xf]  ;;  %v2755_v26 = vld [vmem:[#allocation4 + $0x204] sm:$0xf]  ;;  %v1926_v32 = vor.u32 %v2695_v18, %v1925_v17  ;;  %893 = vmatpush.bf16.msra.mxu1 %v2214_v20  ;;  %v1930_v37 = vor.u32 %v2691_v23, %v1927_v24  ;;  %921 = vmatpush.bf16.msra.mxu3 %v2218_v25  ;;  %v2736_v62 = vld [vmem:[#allocation4 + $0x164] sm:$0xf0] }
  0x34   :  { %v2759_v22 = vld [vmem:[#allocation4 + $0x21c] sm:$0xf0]  ;;  %v2183_v27 = vld [vmem:[#allocation4 + $0x220] sm:$0xf0]  ;;  %v2349_v63 = vld [vmem:[#allocation4 + $0x348] sm:$0xf]  ;;  %v2094_v6 = vor.u32 %v2736_v62, %v2093_v61 }
  0x35   :  { %v2182_v36 = vor.u32 %v2759_v22, %v2181_v19  ;;  %v81_v39 = vld [vmem:[#allocation2] sm:$0xff]  ;;  %v2186_v41 = vor.u32 %v2755_v26, %v2183_v27  ;;  %880 = vmatpush.bf16.msra.mxu0 %v1926_v32  ;;  %908 = vmatpush.bf16.msra.mxu2 %v1930_v37  ;;  %v2800_v1 = vld [vmem:[#allocation4 + $0x364] sm:$0xf0]  ;;  %v2732_v2 = vld [vmem:[#allocation4 + $0x14c] sm:$0xf] }
  0x36   :  { %v3080_v51 = vpack.c.bf16 %v83_v40, %v81_v39  ;;  %v2095_v3 = vld [vmem:[#allocation4 + $0x168] sm:$0xf0]  ;;  %v2350_v7 = vor.u32 %v2800_v1, %v2349_v63  ;;  %v2061_v9 = vld [vmem:[#allocation4 + $0x108] sm:$0xf] }
  0x37   :  { %894 = vmatpush.bf16.msra.mxu1 %v2182_v36  ;;  %922 = vmatpush.bf16.msra.mxu3 %v2186_v41  ;;  %v2796_v4 = vld [vmem:[#allocation4 + $0x34c] sm:$0xf]  ;;  %v2098_v8 = vor.u32 %v2732_v2, %v2095_v3  ;;  %v2728_v10 = vld [vmem:[#allocation4 + $0x124] sm:$0xf0] }
  0x38   :  { %881 = vmatmul.bf16.vlgmr.msra.gmra.mxu0 %v3080_v51  ;;  %909 = vmatmul.bf16.vlgmr.msra.gmra.mxu2 %v3080_v51  ;;  %v2351_v5 = vld [vmem:[#allocation4 + $0x368] sm:$0xf0]  ;;  %v2317_v11 = vld [vmem:[#allocation4 + $0x308] sm:$0xf]  ;;  %v2062_v18 = vor.u32 %v2728_v10, %v2061_v9  ;;  %v2749_v9 = vld [vmem:[#allocation4 + $0x1d4] sm:$0xf] }
  0x39   :  { %929 = vmatpush.bf16.msrb.mxu0 %v2158_v42  ;;  %957 = vmatpush.bf16.msrb.mxu2 %v2162_v46  ;;  %v2354_v12 = vor.u32 %v2796_v4, %v2351_v5  ;;  %v2792_v13 = vld [vmem:[#allocation4 + $0x324] sm:$0xf0]  ;;  %v2724_v14 = vld [vmem:[#allocation4 + $0x10c] sm:$0xf]  ;;  %v2165_v4 = vld [vmem:[#allocation4 + $0x1d0] sm:$0xf] }
  0x3a   :  { %895 = vmatmul.bf16.vlgmr.msra.gmra.mxu1 %v3082_v55  ;;  %923 = vmatmul.bf16.vlgmr.msra.gmra.mxu3 %v3082_v55  ;;  %v2063_v15 = vld [vmem:[#allocation4 + $0x128] sm:$0xf0]  ;;  %v2318_v19 = vor.u32 %v2792_v13, %v2317_v11  ;;  %v2029_v21 = vld [vmem:[#allocation4 + $0xc8] sm:$0xf]  ;;  %v2753_v5 = vld [vmem:[#allocation4 + $0x1ec] sm:$0xf0] }
  0x3b   :  { %943 = vmatpush.bf16.msrb.mxu1 %v2414_v45  ;;  %971 = vmatpush.bf16.msrb.mxu3 %v2418_v50  ;;  %v2788_v16 = vld [vmem:[#allocation4 + $0x30c] sm:$0xf]  ;;  %v2066_v20 = vor.u32 %v2724_v14, %v2063_v15  ;;  %v2720_v22 = vld [vmem:[#allocation4 + $0xe4] sm:$0xf0]  ;;  %v2167_v10 = vld [vmem:[#allocation4 + $0x1f0] sm:$0xf0] }
  0x3c   :  { %v2319_v17 = vld [vmem:[#allocation4 + $0x328] sm:$0xf0]  ;;  %v2285_v23 = vld [vmem:[#allocation4 + $0x2c8] sm:$0xf]  ;;  %v2030_v30 = vor.u32 %v2720_v22, %v2029_v21  ;;  %v2813_v13 = vld [vmem:[#allocation4 + $0x3d4] sm:$0xf] }
  0x3d   :  { %930 = vmatpush.bf16.msrb.mxu0 %v2126_v58  ;;  %958 = vmatpush.bf16.msrb.mxu2 %v2130_v60  ;;  %v2322_v24 = vor.u32 %v2788_v16, %v2319_v17  ;;  %v2784_v25 = vld [vmem:[#allocation4 + $0x2e4] sm:$0xf0]  ;;  %v2716_v26 = vld [vmem:[#allocation4 + $0xcc] sm:$0xf]  ;;  %v2423_v14 = vld [vmem:[#allocation4 + $0x3f0] sm:$0xf0]  ;;  %v2166_v16 = vor.u32 %v2753_v5, %v2165_v4 }
  0x3e   :  { %v2031_v27 = vld [vmem:[#allocation4 + $0xe8] sm:$0xf0]  ;;  %v2286_v31 = vor.u32 %v2784_v25, %v2285_v23  ;;  %v1997_v33 = vld [vmem:[#allocation4 + $0x88] sm:$0xf]  ;;  %v2389_v21 = vld [vmem:[#allocation4 + $0x390] sm:$0xf]  ;;  %v2426_v22 = vor.u32 %v2813_v13, %v2423_v14 }
  0x3f   :  { %944 = vmatpush.bf16.msrb.mxu1 %v2382_v59  ;;  %972 = vmatpush.bf16.msrb.mxu3 %v2386_v0  ;;  %v2780_v28 = vld [vmem:[#allocation4 + $0x2cc] sm:$0xf]  ;;  %v2034_v32 = vor.u32 %v2716_v26, %v2031_v27  ;;  %v2712_v34 = vld [vmem:[#allocation4 + $0xa4] sm:$0xf0]  ;;  %v2809_v23 = vld [vmem:[#allocation4 + $0x3ac] sm:$0xf0] }
  0x40   :  { %v2287_v29 = vld [vmem:[#allocation4 + $0x2e8] sm:$0xf0]  ;;  %v2253_v35 = vld [vmem:[#allocation4 + $0x288] sm:$0xf]  ;;  %v1998_v42 = vor.u32 %v2712_v34, %v1997_v33  ;;  %v2135_v25 = vld [vmem:[#allocation4 + $0x1b0] sm:$0xf0] }
  0x41   :  { %931 = vmatpush.bf16.msrb.mxu0 %v2094_v6  ;;  %959 = vmatpush.bf16.msrb.mxu2 %v2098_v8  ;;  %v2290_v36 = vor.u32 %v2780_v28, %v2287_v29  ;;  %v2776_v37 = vld [vmem:[#allocation4 + $0x2a4] sm:$0xf0]  ;;  %v2708_v38 = vld [vmem:[#allocation4 + $0x8c] sm:$0xf]  ;;  %v2421_v6 = vld [vmem:[#allocation4 + $0x3d0] sm:$0xf]  ;;  %v2390_v29 = vor.u32 %v2809_v23, %v2389_v21 }
  0x42   :  { %v1999_v39 = vld [vmem:[#allocation4 + $0xa8] sm:$0xf0]  ;;  %v2254_v43 = vor.u32 %v2776_v37, %v2253_v35  ;;  %v1965_v45 = vld [vmem:[#allocation4 + $0x48] sm:$0xf]  ;;  %v2817_v8 = vld [vmem:[#allocation4 + $0x3ec] sm:$0xf0] }
  0x43   :  { %945 = vmatpush.bf16.msrb.mxu1 %v2350_v7  ;;  %973 = vmatpush.bf16.msrb.mxu3 %v2354_v12  ;;  %v2772_v40 = vld [vmem:[#allocation4 + $0x28c] sm:$0xf]  ;;  %v2002_v44 = vor.u32 %v2708_v38, %v1999_v39  ;;  %v2704_v46 = vld [vmem:[#allocation4 + $0x64] sm:$0xf0]  ;;  %v2422_v17 = vor.u32 %v2817_v8, %v2421_v6  ;;  %v2805_v26 = vld [vmem:[#allocation4 + $0x394] sm:$0xf] }
  0x44   :  { %v2255_v41 = vld [vmem:[#allocation4 + $0x2a8] sm:$0xf0]  ;;  %v2221_v47 = vld [vmem:[#allocation4 + $0x248] sm:$0xf]  ;;  %v1966_v56 = vor.u32 %v2704_v46, %v1965_v45  ;;  %v2391_v27 = vld [vmem:[#allocation4 + $0x3b0] sm:$0xf0] }
  0x45   :  { %932 = vmatpush.bf16.msrb.mxu0 %v2062_v18  ;;  %960 = vmatpush.bf16.msrb.mxu2 %v2066_v20  ;;  %v2258_v48 = vor.u32 %v2772_v40, %v2255_v41  ;;  %v2768_v49 = vld [vmem:[#allocation4 + $0x264] sm:$0xf0]  ;;  %v2700_v50 = vld [vmem:[#allocation4 + $0x4c] sm:$0xf]  ;;  %v2170_v18 = vor.u32 %v2749_v9, %v2167_v10  ;;  %v2745_v20 = vld [vmem:[#allocation4 + $0x1ac] sm:$0xf0]  ;;  %v2394_v34 = vor.u32 %v2805_v26, %v2391_v27 }
  0x46   :  { %v1967_v52 = vld [vmem:[#allocation4 + $0x68] sm:$0xf0]  ;;  %v1933_v57 = vld [vmem:[#allocation4 + $0x8] sm:$0xf]  ;;  %v2222_v59 = vor.u32 %v2768_v49, %v2221_v47  ;;  %v2357_v33 = vld [vmem:[#allocation4 + $0x350] sm:$0xf] }
  0x47   :  { %946 = vmatpush.bf16.msrb.mxu1 %v2318_v19  ;;  %974 = vmatpush.bf16.msrb.mxu3 %v2322_v24  ;;  %v2764_v53 = vld [vmem:[#allocation4 + $0x24c] sm:$0xf]  ;;  %v2696_v58 = vld [vmem:[#allocation4 + $0x24] sm:$0xf0]  ;;  %v1970_v60 = vor.u32 %v2700_v50, %v1967_v52  ;;  %v2133_v19 = vld [vmem:[#allocation4 + $0x190] sm:$0xf] }
  0x48   :  { %v2223_v54 = vld [vmem:[#allocation4 + $0x268] sm:$0xf0]  ;;  %v2189_v61 = vld [vmem:[#allocation4 + $0x208] sm:$0xf]  ;;  %v1934_v7 = vor.u32 %v2696_v58, %v1933_v57  ;;  %v2741_v24 = vld [vmem:[#allocation4 + $0x194] sm:$0xf]  ;;  %v2134_v28 = vor.u32 %v2745_v20, %v2133_v19 }
  0x49   :  { %933 = vmatpush.bf16.msrb.mxu0 %v2030_v30  ;;  %961 = vmatpush.bf16.msrb.mxu2 %v2034_v32  ;;  %v2760_v62 = vld [vmem:[#allocation4 + $0x224] sm:$0xf0]  ;;  %v2692_v63 = vld [vmem:[#allocation4 + $0xc] sm:$0xf]  ;;  %v2226_v0 = vor.u32 %v2764_v53, %v2223_v54  ;;  %v2138_v30 = vor.u32 %v2741_v24, %v2135_v25  ;;  %v2737_v32 = vld [vmem:[#allocation4 + $0x16c] sm:$0xf0] }
  0x4a   :  { %v1935_v1 = vld [vmem:[#allocation4 + $0x28] sm:$0xf0]  ;;  %v2190_v11 = vor.u32 %v2760_v62, %v2189_v61  ;;  %v2801_v35 = vld [vmem:[#allocation4 + $0x36c] sm:$0xf0]  ;;  %v2103_v37 = vld [vmem:[#allocation4 + $0x170] sm:$0xf0] }
  0x4b   :  { %947 = vmatpush.bf16.msrb.mxu1 %v2286_v31  ;;  %975 = vmatpush.bf16.msrb.mxu3 %v2290_v36  ;;  %v2756_v2 = vld [vmem:[#allocation4 + $0x20c] sm:$0xf]  ;;  %v1938_v12 = vor.u32 %v2692_v63, %v1935_v1  ;;  %v2101_v31 = vld [vmem:[#allocation4 + $0x150] sm:$0xf]  ;;  %v2733_v36 = vld [vmem:[#allocation4 + $0x154] sm:$0xf]  ;;  %v2358_v41 = vor.u32 %v2801_v35, %v2357_v33 }
  0x4c   :  { %v2191_v3 = vld [vmem:[#allocation4 + $0x228] sm:$0xf0]  ;;  %v2797_v38 = vld [vmem:[#allocation4 + $0x354] sm:$0xf]  ;;  %v2102_v40 = vor.u32 %v2737_v32, %v2101_v31  ;;  %v2325_v45 = vld [vmem:[#allocation4 + $0x310] sm:$0xf] }
  0x4d   :  { %934 = vmatpush.bf16.msrb.mxu0 %v1998_v42  ;;  %962 = vmatpush.bf16.msrb.mxu2 %v2002_v44  ;;  %v2194_v15 = vor.u32 %v2756_v2, %v2191_v3  ;;  %v2359_v39 = vld [vmem:[#allocation4 + $0x370] sm:$0xf0]  ;;  %v2106_v42 = vor.u32 %v2733_v36, %v2103_v37  ;;  %v2729_v44 = vld [vmem:[#allocation4 + $0x12c] sm:$0xf0] }
  0x4e   :  { %v2362_v46 = vor.u32 %v2797_v38, %v2359_v39  ;;  %v2793_v47 = vld [vmem:[#allocation4 + $0x32c] sm:$0xf0]  ;;  %v2071_v49 = vld [vmem:[#allocation4 + $0x130] sm:$0xf0]  ;;  %v2173_v38 = vld [vmem:[#allocation4 + $0x1d8] sm:$0xf] }
  0x4f   :  { %948 = vmatpush.bf16.msrb.mxu1 %v2254_v43  ;;  %976 = vmatpush.bf16.msrb.mxu3 %v2258_v48  ;;  %v2069_v43 = vld [vmem:[#allocation4 + $0x110] sm:$0xf]  ;;  %v2725_v48 = vld [vmem:[#allocation4 + $0x114] sm:$0xf]  ;;  %v2326_v54 = vor.u32 %v2793_v47, %v2325_v45  ;;  %v2754_v39 = vld [vmem:[#allocation4 + $0x1f4] sm:$0xf0] }
  0x50   :  { %v2789_v50 = vld [vmem:[#allocation4 + $0x314] sm:$0xf]  ;;  %v2070_v53 = vor.u32 %v2729_v44, %v2069_v43  ;;  %v2037_v57 = vld [vmem:[#allocation4 + $0xd0] sm:$0xf]  ;;  %v2750_v43 = vld [vmem:[#allocation4 + $0x1dc] sm:$0xf] }
  0x51   :  { %935 = vmatpush.bf16.msrb.mxu0 %v1966_v56  ;;  %963 = vmatpush.bf16.msrb.mxu2 %v1970_v60  ;;  %v2327_v52 = vld [vmem:[#allocation4 + $0x330] sm:$0xf0]  ;;  %v2074_v56 = vor.u32 %v2725_v48, %v2071_v49  ;;  %v2721_v58 = vld [vmem:[#allocation4 + $0xec] sm:$0xf0]  ;;  %v2175_v44 = vld [vmem:[#allocation4 + $0x1f8] sm:$0xf0] }
  0x52   :  { %v2330_v60 = vor.u32 %v2789_v50, %v2327_v52  ;;  %v2785_v61 = vld [vmem:[#allocation4 + $0x2ec] sm:$0xf0]  ;;  %v2717_v62 = vld [vmem:[#allocation4 + $0xd4] sm:$0xf]  ;;  %v2038_v2 = vor.u32 %v2721_v58, %v2037_v57  ;;  %v2814_v47 = vld [vmem:[#allocation4 + $0x3dc] sm:$0xf]  ;;  %v2174_v50 = vor.u32 %v2754_v39, %v2173_v38 }
  0x53   :  { %949 = vmatpush.bf16.msrb.mxu1 %v2222_v59  ;;  %977 = vmatpush.bf16.msrb.mxu3 %v2226_v0  ;;  %v2293_v59 = vld [vmem:[#allocation4 + $0x2d0] sm:$0xf]  ;;  %v2039_v63 = vld [vmem:[#allocation4 + $0xf0] sm:$0xf0]  ;;  %v2431_v48 = vld [vmem:[#allocation4 + $0x3f8] sm:$0xf0] }
  0x54   :  { %v2781_v0 = vld [vmem:[#allocation4 + $0x2d4] sm:$0xf]  ;;  %v2294_v3 = vor.u32 %v2785_v61, %v2293_v59  ;;  %v2042_v4 = vor.u32 %v2717_v62, %v2039_v63  ;;  %v2005_v5 = vld [vmem:[#allocation4 + $0x90] sm:$0xf]  ;;  %v2397_v57 = vld [vmem:[#allocation4 + $0x398] sm:$0xf]  ;;  %v2434_v58 = vor.u32 %v2814_v47, %v2431_v48 }
  0x55   :  { %936 = vmatpush.bf16.msrb.mxu0 %v1934_v7  ;;  %964 = vmatpush.bf16.msrb.mxu2 %v1938_v12  ;;  %v2295_v1 = vld [vmem:[#allocation4 + $0x2f0] sm:$0xf0]  ;;  %v2713_v6 = vld [vmem:[#allocation4 + $0xac] sm:$0xf0]  ;;  %v2810_v59 = vld [vmem:[#allocation4 + $0x3b4] sm:$0xf0] }
  0x56   :  { %v2261_v7 = vld [vmem:[#allocation4 + $0x290] sm:$0xf]  ;;  %v2298_v8 = vor.u32 %v2781_v0, %v2295_v1  ;;  %v2709_v10 = vld [vmem:[#allocation4 + $0x94] sm:$0xf]  ;;  %v2006_v14 = vor.u32 %v2713_v6, %v2005_v5  ;;  %v2143_v61 = vld [vmem:[#allocation4 + $0x1b8] sm:$0xf0]  ;;  %v2398_v1 = vor.u32 %v2810_v59, %v2397_v57 }
  0x57   :  { %950 = vmatpush.bf16.msrb.mxu1 %v2190_v11  ;;  %978 = vmatpush.bf16.msrb.mxu3 %v2194_v15  ;;  %v2777_v9 = vld [vmem:[#allocation4 + $0x2ac] sm:$0xf0]  ;;  %v2007_v11 = vld [vmem:[#allocation4 + $0xb0] sm:$0xf0]  ;;  %v2806_v62 = vld [vmem:[#allocation4 + $0x39c] sm:$0xf] }
  0x58   :  { %937 = vmatmul.bf16.vlgmr.msrb.gmra.mxu0 %v3080_v51  ;;  %965 = vmatmul.bf16.vlgmr.msrb.gmra.mxu2 %v3080_v51  ;;  %v2773_v12 = vld [vmem:[#allocation4 + $0x294] sm:$0xf]  ;;  %v2262_v15 = vor.u32 %v2777_v9, %v2261_v7  ;;  %v2229_v19 = vld [vmem:[#allocation4 + $0x250] sm:$0xf]  ;;  %v2399_v63 = vld [vmem:[#allocation4 + $0x3b8] sm:$0xf0] }
  0x59   :  { %985 = vmatpush.bf16.msra.mxu0 %v2166_v16  ;;  %1013 = vmatpush.bf16.msra.mxu2 %v2170_v18  ;;  %v2263_v13 = vld [vmem:[#allocation4 + $0x2b0] sm:$0xf0]  ;;  %v2010_v16 = vor.u32 %v2709_v10, %v2007_v11  ;;  %v2705_v18 = vld [vmem:[#allocation4 + $0x6c] sm:$0xf0]  ;;  %v2365_v5 = vld [vmem:[#allocation4 + $0x358] sm:$0xf]  ;;  %v2402_v6 = vor.u32 %v2806_v62, %v2399_v63 }
  0x5a   :  { %951 = vmatmul.bf16.vlgmr.msrb.gmra.mxu1 %v3082_v55  ;;  %979 = vmatmul.bf16.vlgmr.msrb.gmra.mxu3 %v3082_v55  ;;  %v2266_v20 = vor.u32 %v2773_v12, %v2263_v13  ;;  %v2769_v21 = vld [vmem:[#allocation4 + $0x26c] sm:$0xf0]  ;;  %v1975_v23 = vld [vmem:[#allocation4 + $0x70] sm:$0xf0]  ;;  %v2802_v7 = vld [vmem:[#allocation4 + $0x374] sm:$0xf0] }
  0x5b   :  { %999 = vmatpush.bf16.msra.mxu1 %v2422_v17  ;;  %1027 = vmatpush.bf16.msra.mxu3 %v2426_v22  ;;  %v1973_v17 = vld [vmem:[#allocation4 + $0x50] sm:$0xf]  ;;  %v2701_v22 = vld [vmem:[#allocation4 + $0x54] sm:$0xf]  ;;  %v2111_v9 = vld [vmem:[#allocation4 + $0x178] sm:$0xf0]  ;;  %v2366_v13 = vor.u32 %v2802_v7, %v2365_v5 }
  0x5c   :  { %v2765_v24 = vld [vmem:[#allocation4 + $0x254] sm:$0xf]  ;;  %v1974_v26 = vor.u32 %v2705_v18, %v1973_v17  ;;  %v1941_v27 = vld [vmem:[#allocation4 + $0x10] sm:$0xf]  ;;  %v2798_v10 = vld [vmem:[#allocation4 + $0x35c] sm:$0xf] }
  0x5d   :  { %986 = vmatpush.bf16.msra.mxu0 %v2134_v28  ;;  %1014 = vmatpush.bf16.msra.mxu2 %v2138_v30  ;;  %v2231_v25 = vld [vmem:[#allocation4 + $0x270] sm:$0xf0]  ;;  %v2697_v28 = vld [vmem:[#allocation4 + $0x2c] sm:$0xf0]  ;;  %v1978_v30 = vor.u32 %v2701_v22, %v1975_v23  ;;  %v2367_v11 = vld [vmem:[#allocation4 + $0x378] sm:$0xf0] }
  0x5e   :  { %v2197_v31 = vld [vmem:[#allocation4 + $0x210] sm:$0xf]  ;;  %v2693_v33 = vld [vmem:[#allocation4 + $0x14] sm:$0xf]  ;;  %v2333_v17 = vld [vmem:[#allocation4 + $0x318] sm:$0xf]  ;;  %v2370_v18 = vor.u32 %v2798_v10, %v2367_v11 }
  0x5f   :  { %1000 = vmatpush.bf16.msra.mxu1 %v2390_v29  ;;  %1028 = vmatpush.bf16.msra.mxu3 %v2394_v34  ;;  %v2230_v29 = vor.u32 %v2769_v21, %v2229_v19  ;;  %v2761_v32 = vld [vmem:[#allocation4 + $0x22c] sm:$0xf0]  ;;  %v2234_v34 = vor.u32 %v2765_v24, %v2231_v25  ;;  %v1943_v35 = vld [vmem:[#allocation4 + $0x30] sm:$0xf0]  ;;  %v2794_v19 = vld [vmem:[#allocation4 + $0x334] sm:$0xf0] }
  0x60   :  { %v2757_v36 = vld [vmem:[#allocation4 + $0x214] sm:$0xf]  ;;  %v2198_v45 = vor.u32 %v2761_v32, %v2197_v31  ;;  %v2079_v21 = vld [vmem:[#allocation4 + $0x138] sm:$0xf0]  ;;  %v2334_v25 = vor.u32 %v2794_v19, %v2333_v17  ;;  %v2786_v31 = vld [vmem:[#allocation4 + $0x2f4] sm:$0xf0] }
  0x61   :  { %987 = vmatpush.bf16.msra.mxu0 %v2102_v40  ;;  %1015 = vmatpush.bf16.msra.mxu2 %v2106_v42  ;;  %v2199_v37 = vld [vmem:[#allocation4 + $0x230] sm:$0xf0]  ;;  %v2429_v40 = vld [vmem:[#allocation4 + $0x3d8] sm:$0xf]  ;;  %v2790_v22 = vld [vmem:[#allocation4 + $0x31c] sm:$0xf] }
  0x62   :  { %v2818_v42 = vld [vmem:[#allocation4 + $0x3f4] sm:$0xf0]  ;;  %v2202_v49 = vor.u32 %v2757_v36, %v2199_v37  ;;  %v2335_v23 = vld [vmem:[#allocation4 + $0x338] sm:$0xf0]  ;;  %v2824_v17 = vld [vmem:[#allocation7 + $0x28] sm:$0xff] }
  0x63   :  { %1001 = vmatpush.bf16.msra.mxu1 %v2358_v41  ;;  %1029 = vmatpush.bf16.msra.mxu3 %v2362_v46  ;;  %v1942_v41 = vor.u32 %v2697_v28, %v1941_v27  ;;  %v1946_v46 = vor.u32 %v2693_v33, %v1943_v35  ;;  %v2430_v52 = vor.u32 %v2818_v42, %v2429_v40  ;;  %v2045_v27 = vld [vmem:[#allocation4 + $0xd8] sm:$0xf]  ;;  %v2718_v32 = vld [vmem:[#allocation4 + $0xdc] sm:$0xf]  ;;  %v2823_v19 = vld [vmem:[#allocation7 + $0x20] sm:$0xff] }
  0x64   :  { %v2722_v28 = vld [vmem:[#allocation4 + $0xf4] sm:$0xf0]  ;;  %v2047_v33 = vld [vmem:[#allocation4 + $0xf8] sm:$0xf0] }
  0x65   :  { %988 = vmatpush.bf16.msra.mxu0 %v2070_v53  ;;  %1016 = vmatpush.bf16.msra.mxu2 %v2074_v56  ;;  %v2178_v53 = vor.u32 %v2750_v43, %v2175_v44  ;;  %v2746_v56 = vld [vmem:[#allocation4 + $0x1b4] sm:$0xf0]  ;;  %v2303_v35 = vld [vmem:[#allocation4 + $0x2f8] sm:$0xf0]  ;;  %v2046_v36 = vor.u32 %v2722_v28, %v2045_v27  ;;  %v2050_v38 = vor.u32 %v2718_v32, %v2047_v33  ;;  %v2842_v33 = vld [vmem:[#allocation7 + $0xb8] sm:$0xff] }
  0x66   :  { %v2013_v39 = vld [vmem:[#allocation4 + $0x98] sm:$0xf]  ;;  %v2710_v44 = vld [vmem:[#allocation4 + $0x9c] sm:$0xf] }
  0x67   :  { %1002 = vmatpush.bf16.msra.mxu1 %v2326_v54  ;;  %1030 = vmatpush.bf16.msra.mxu3 %v2330_v60  ;;  %v2141_v54 = vld [vmem:[#allocation4 + $0x198] sm:$0xf]  ;;  %v2742_v60 = vld [vmem:[#allocation4 + $0x19c] sm:$0xf] }
  0x68   :  { %v2142_v0 = vor.u32 %v2746_v56, %v2141_v54  ;;  %v2714_v40 = vld [vmem:[#allocation4 + $0xb4] sm:$0xf0]  ;;  %v2271_v47 = vld [vmem:[#allocation4 + $0x2b8] sm:$0xf0] }
  0x69   :  { %989 = vmatpush.bf16.msra.mxu0 %v2038_v2  ;;  %1017 = vmatpush.bf16.msra.mxu2 %v2042_v4  ;;  %v2146_v2 = vor.u32 %v2742_v60, %v2143_v61  ;;  %v2738_v4 = vld [vmem:[#allocation4 + $0x174] sm:$0xf0]  ;;  %v2014_v48 = vor.u32 %v2714_v40, %v2013_v39  ;;  %v1983_v59 = vld [vmem:[#allocation4 + $0x78] sm:$0xf0] }
  0x6a   :  { %v2778_v43 = vld [vmem:[#allocation4 + $0x2b4] sm:$0xf0]  ;;  %v2766_v60 = vld [vmem:[#allocation4 + $0x25c] sm:$0xf] }
  0x6b   :  { %1003 = vmatpush.bf16.msra.mxu1 %v2294_v3  ;;  %1031 = vmatpush.bf16.msra.mxu3 %v2298_v8  ;;  %v2109_v3 = vld [vmem:[#allocation4 + $0x158] sm:$0xf]  ;;  %v2734_v8 = vld [vmem:[#allocation4 + $0x15c] sm:$0xf] }
  0x6c   :  { %v2110_v12 = vor.u32 %v2738_v4, %v2109_v3  ;;  %v2237_v54 = vld [vmem:[#allocation4 + $0x258] sm:$0xf]  ;;  %v2239_v61 = vld [vmem:[#allocation4 + $0x278] sm:$0xf0] }
  0x6d   :  { %990 = vmatpush.bf16.msra.mxu0 %v2006_v14  ;;  %1018 = vmatpush.bf16.msra.mxu2 %v2010_v16  ;;  %v2114_v14 = vor.u32 %v2734_v8, %v2111_v9  ;;  %v2730_v16 = vld [vmem:[#allocation4 + $0x134] sm:$0xf0]  ;;  %v2242_v4 = vor.u32 %v2766_v60, %v2239_v61  ;;  %v1951_v7 = vld [vmem:[#allocation4 + $0x38] sm:$0xf0] }
  0x6e   :  { %v2770_v57 = vld [vmem:[#allocation4 + $0x274] sm:$0xf0]  ;;  %v2758_v8 = vld [vmem:[#allocation4 + $0x21c] sm:$0xf] }
  0x6f   :  { %1004 = vmatpush.bf16.msra.mxu1 %v2262_v15  ;;  %1032 = vmatpush.bf16.msra.mxu3 %v2266_v20  ;;  %v2077_v15 = vld [vmem:[#allocation4 + $0x118] sm:$0xf]  ;;  %v2726_v20 = vld [vmem:[#allocation4 + $0x11c] sm:$0xf]  ;;  %v2238_v63 = vor.u32 %v2770_v57, %v2237_v54 }
  0x70   :  { %v2078_v24 = vor.u32 %v2730_v16, %v2077_v15  ;;  %v2205_v3 = vld [vmem:[#allocation4 + $0x218] sm:$0xf]  ;;  %v2207_v9 = vld [vmem:[#allocation4 + $0x238] sm:$0xf0]  ;;  %v2834_v16 = vld [vmem:[#allocation7 + $0x78] sm:$0xff] }
  0x71   :  { %991 = vmatpush.bf16.msra.mxu0 %v1974_v26  ;;  %1019 = vmatpush.bf16.msra.mxu2 %v1978_v30  ;;  %v2082_v26 = vor.u32 %v2726_v20, %v2079_v21  ;;  %v2338_v30 = vor.u32 %v2790_v22, %v2335_v23  ;;  %v2762_v5 = vld [vmem:[#allocation4 + $0x234] sm:$0xf0]  ;;  %v2832_v20 = vld [vmem:[#allocation7 + $0x68] sm:$0xff]  ;;  %v2822_v21 = vld [vmem:[#allocation7 + $0x18] sm:$0xff] }
  0x72   :  { %v2206_v11 = vor.u32 %v2762_v5, %v2205_v3  ;;  %v2825_v15 = vld [vmem:[#allocation7 + $0x30] sm:$0xff]  ;;  %v2831_v22 = vld [vmem:[#allocation7 + $0x60] sm:$0xff]  ;;  %v2830_v23 = vld [vmem:[#allocation7 + $0x58] sm:$0xff] }
  0x73   :  { %1005 = vmatpush.bf16.msra.mxu1 %v2230_v29  ;;  %1033 = vmatpush.bf16.msra.mxu3 %v2234_v34  ;;  %v2301_v29 = vld [vmem:[#allocation4 + $0x2d8] sm:$0xf]  ;;  %v2782_v34 = vld [vmem:[#allocation4 + $0x2dc] sm:$0xf]  ;;  %v2848_v3 = vld [vmem:[#allocation7 + $0xe8] sm:$0xff] }
  0x74   :  { %v2302_v37 = vor.u32 %v2786_v31, %v2301_v29  ;;  %v2306_v42 = vor.u32 %v2782_v34, %v2303_v35  ;;  %v2829_v29 = vld [vmem:[#allocation7 + $0x50] sm:$0xff]  ;;  %v2819_v31 = vld [vmem:[#allocation7] sm:$0xff]  ;;  %v2828_v35 = vld [vmem:[#allocation7 + $0x48] sm:$0xff] }
  0x75   :  { %992 = vmatpush.bf16.msra.mxu0 %v1942_v41  ;;  %1020 = vmatpush.bf16.msra.mxu2 %v1946_v46  ;;  %v2269_v41 = vld [vmem:[#allocation4 + $0x298] sm:$0xf]  ;;  %v2774_v46 = vld [vmem:[#allocation4 + $0x29c] sm:$0xf] }
  0x76   :  { %v2274_v56 = vor.u32 %v2774_v46, %v2271_v47  ;;  %v2850_v47 = vld [vmem:[#allocation7 + $0xf8] sm:$0xff]  ;;  %v2849_v57 = vld [vmem:[#allocation7 + $0xf0] sm:$0xff] }
  0x77   :  { %1006 = vmatpush.bf16.msra.mxu1 %v2198_v45  ;;  %1034 = vmatpush.bf16.msra.mxu3 %v2202_v49  ;;  %v2015_v45 = vld [vmem:[#allocation4 + $0xb8] sm:$0xf0]  ;;  %v2270_v49 = vor.u32 %v2778_v43, %v2269_v41 }
  0x78   :  { %993 = vmatmul.bf16.vlgmr.msra.gmra.mxu0 %v3080_v51  ;;  %1021 = vmatmul.bf16.vlgmr.msra.gmra.mxu2 %v3080_v51  ;;  %v2841_v41 = vld [vmem:[#allocation7 + $0xb0] sm:$0xff] }
  0x79   :  { %1041 = vmatpush.bf16.msrb.mxu0 %v2174_v50  ;;  %1069 = vmatpush.bf16.msrb.mxu2 %v2178_v53  ;;  %v2018_v50 = vor.u32 %v2710_v44, %v2015_v45  ;;  %v2706_v53 = vld [vmem:[#allocation4 + $0x74] sm:$0xf0]  ;;  %v2827_v45 = vld [vmem:[#allocation7 + $0x40] sm:$0xff] }
  0x7a   :  { %1007 = vmatmul.bf16.vlgmr.msra.gmra.mxu1 %v3082_v55  ;;  %1035 = vmatmul.bf16.vlgmr.msra.gmra.mxu3 %v3082_v55 }
  0x7b   :  { %1055 = vmatpush.bf16.msrb.mxu1 %v2430_v52  ;;  %1083 = vmatpush.bf16.msrb.mxu3 %v2434_v58  ;;  %v1981_v52 = vld [vmem:[#allocation4 + $0x58] sm:$0xf]  ;;  %v2702_v58 = vld [vmem:[#allocation4 + $0x5c] sm:$0xf] }
  0x7c   :  { %v1982_v62 = vor.u32 %v2706_v53, %v1981_v52  ;;  %v2840_v52 = vld [vmem:[#allocation7 + $0xa8] sm:$0xff] }
  0x7d   :  { %1042 = vmatpush.bf16.msrb.mxu0 %v2142_v0  ;;  %1070 = vmatpush.bf16.msrb.mxu2 %v2146_v2  ;;  %v1986_v0 = vor.u32 %v2702_v58, %v1983_v59  ;;  %v2698_v2 = vld [vmem:[#allocation4 + $0x34] sm:$0xf0] }
  0x7f   :  { %1056 = vmatpush.bf16.msrb.mxu1 %v2398_v1  ;;  %1084 = vmatpush.bf16.msrb.mxu3 %v2402_v6  ;;  %v1949_v1 = vld [vmem:[#allocation4 + $0x18] sm:$0xf]  ;;  %v2694_v6 = vld [vmem:[#allocation4 + $0x1c] sm:$0xf] }
  0x80   :  { %v1950_v10 = vor.u32 %v2698_v2, %v1949_v1 }
  0x81   :  { %1043 = vmatpush.bf16.msrb.mxu0 %v2110_v12  ;;  %1071 = vmatpush.bf16.msrb.mxu2 %v2114_v14  ;;  %v1954_v12 = vor.u32 %v2694_v6, %v1951_v7  ;;  %v2826_v14 = vld [vmem:[#allocation7 + $0x38] sm:$0xff] }
  0x82   :  { %v2838_v7 = vld [vmem:[#allocation7 + $0x98] sm:$0xff] }
  0x83   :  { %1057 = vmatpush.bf16.msrb.mxu1 %v2366_v13  ;;  %1085 = vmatpush.bf16.msrb.mxu3 %v2370_v18  ;;  %v2210_v13 = vor.u32 %v2758_v8, %v2207_v9  ;;  %v2833_v18 = vld [vmem:[#allocation7 + $0x70] sm:$0xff] }
  0x85   :  { %1044 = vmatpush.bf16.msrb.mxu0 %v2078_v24  ;;  %1072 = vmatpush.bf16.msrb.mxu2 %v2082_v26 }
  0x87   :  { %1058 = vmatpush.bf16.msrb.mxu1 %v2334_v25  ;;  %1086 = vmatpush.bf16.msrb.mxu3 %v2338_v30  ;;  %v2820_v25 = vld [vmem:[#allocation7 + $0x8] sm:$0xff] }
  0x89   :  { %1045 = vmatpush.bf16.msrb.mxu0 %v2046_v36  ;;  %1073 = vmatpush.bf16.msrb.mxu2 %v2050_v38 }
  0x8b   :  { %1059 = vmatpush.bf16.msrb.mxu1 %v2302_v37  ;;  %1087 = vmatpush.bf16.msrb.mxu3 %v2306_v42 }
  0x8d   :  { %1046 = vmatpush.bf16.msrb.mxu0 %v2014_v48  ;;  %1074 = vmatpush.bf16.msrb.mxu2 %v2018_v50 }
  0x8f   :  { %1060 = vmatpush.bf16.msrb.mxu1 %v2270_v49  ;;  %1088 = vmatpush.bf16.msrb.mxu3 %v2274_v56 }
  0x91   :  { %1047 = vmatpush.bf16.msrb.mxu0 %v1982_v62  ;;  %1075 = vmatpush.bf16.msrb.mxu2 %v1986_v0 }
  0x93   :  { %1061 = vmatpush.bf16.msrb.mxu1 %v2238_v63  ;;  %1089 = vmatpush.bf16.msrb.mxu3 %v2242_v4  ;;  %v2839_v63 = vld [vmem:[#allocation7 + $0xa0] sm:$0xff] }
  0x95   :  { %1048 = vmatpush.bf16.msrb.mxu0 %v1950_v10  ;;  %1076 = vmatpush.bf16.msrb.mxu2 %v1954_v12  ;;  %v2847_v10 = vld [vmem:[#allocation7 + $0xe0] sm:$0xff] }
  0x97   :  { %1062 = vmatpush.bf16.msrb.mxu1 %v2206_v11  ;;  %1090 = vmatpush.bf16.msrb.mxu3 %v2210_v13  ;;  %v2837_v13 = vld [vmem:[#allocation7 + $0x90] sm:$0xff] }
  0x98   :  { %1049 = vmatmul.bf16.vlgmr.msrb.gmra.mxu0 %v3080_v51  ;;  %1077 = vmatmul.bf16.vlgmr.msrb.gmra.mxu2 %v3080_v51  ;;  %v3100_v51 = vld [vmem:[#allocation6] sm:$0xff] }
  0x99   :  { %1765 = vmatpush.bf16.msra.mxu0 %v2826_v14  ;;  %v217_v24 = vperm.slane %v3100_v51, 0  ;;  %v218_v32 = vperm.slane %v3100_v51, 1  ;;  %1793 = vmatpush.bf16.msra.mxu2 %v2842_v33 }
  0x9a   :  { %1063 = vmatmul.bf16.vlgmr.msrb.gmra.mxu1 %v3082_v55  ;;  %1091 = vmatmul.bf16.vlgmr.msrb.gmra.mxu3 %v3082_v55  ;;  %v2821_v55 = vld [vmem:[#allocation7 + $0x10] sm:$0xff] }
  0x9b   :  { %1779 = vmatpush.bf16.msra.mxu1 %v2834_v16  ;;  %1807 = vmatpush.bf16.msra.mxu3 %v2850_v47 }
  0x9d   :  { %1766 = vmatpush.bf16.msra.mxu0 %v2825_v15  ;;  %1794 = vmatpush.bf16.msra.mxu2 %v2841_v41 }
  0x9f   :  { %1780 = vmatpush.bf16.msra.mxu1 %v2833_v18  ;;  %1808 = vmatpush.bf16.msra.mxu3 %v2849_v57  ;;  %v219_v18 = vperm.slane %v3100_v51, 2 }
  0xa1   :  { %1767 = vmatpush.bf16.msra.mxu0 %v2824_v17  ;;  %1795 = vmatpush.bf16.msra.mxu2 %v2840_v52  ;;  %v2846_v17 = vld [vmem:[#allocation7 + $0xd8] sm:$0xff] }
  0xa3   :  { %1781 = vmatpush.bf16.msra.mxu1 %v2832_v20  ;;  %1809 = vmatpush.bf16.msra.mxu3 %v2848_v3 }
  0xa5   :  { %1768 = vmatpush.bf16.msra.mxu0 %v2823_v19  ;;  %1796 = vmatpush.bf16.msra.mxu2 %v2839_v63 }
  0xa7   :  { %1782 = vmatpush.bf16.msra.mxu1 %v2831_v22  ;;  %1810 = vmatpush.bf16.msra.mxu3 %v2847_v10  ;;  %v2864_v10 = vld [vmem:[#allocation7 + $0x168] sm:$0xff] }
  0xa9   :  { %1769 = vmatpush.bf16.msra.mxu0 %v2822_v21  ;;  %1797 = vmatpush.bf16.msra.mxu2 %v2838_v7  ;;  %v2836_v21 = vld [vmem:[#allocation7 + $0x88] sm:$0xff] }
  0xab   :  { %1783 = vmatpush.bf16.msra.mxu1 %v2830_v23  ;;  %1811 = vmatpush.bf16.msra.mxu3 %v2846_v17 }
  0xad   :  { %1770 = vmatpush.bf16.msra.mxu0 %v2821_v55  ;;  %1798 = vmatpush.bf16.msra.mxu2 %v2837_v13 }
  0xaf   :  { %1784 = vmatpush.bf16.msra.mxu1 %v2829_v29 }
  0xb1   :  { %1771 = vmatpush.bf16.msra.mxu0 %v2820_v25  ;;  %1799 = vmatpush.bf16.msra.mxu2 %v2836_v21  ;;  %v2853_v21 = vld [vmem:[#allocation7 + $0x110] sm:$0xff] }
  0xb3   :  { %1785 = vmatpush.bf16.msra.mxu1 %v2828_v35  ;;  %v220_v35 = vperm.slane %v3100_v51, 3 }
  0xb5   :  { %v882_v26 = vpop.f32.mrf.mxu0  ;;  %1772 = vmatpush.bf16.msra.mxu0 %v2819_v31 }
  0xb6   :  { %v883_v27 = vadd.f32 %v882_v26, %v217_v24  ;;  %v2845_v26 = vld [vmem:[#allocation7 + $0xd0] sm:$0xff] }
  0xb7   :  { %v896_v28 = vpop.f32.mrf.mxu1  ;;  %1786 = vmatpush.bf16.msra.mxu1 %v2827_v45  ;;  %1812 = vmatpush.bf16.msra.mxu3 %v2845_v26  ;;  %v2857_v45 = vld [vmem:[#allocation7 + $0x130] sm:$0xff]  ;;  %v221_v26 = vperm.slane %v3100_v51, 4 }
  0xb8   :  { %v3103_v30 = vadd.f32 %v896_v28, %v883_v27 }
  0xba   :  { %v1113_v34 = vmul.f32 0.044715, %v3103_v30  ;;  %v1097_v15 = vmul.f32 0.5, %v3103_v30 }
  0xbb   :  { %v910_v37 = vpop.f32.mrf.mxu2 }
  0xbc   :  { %v1129_v36 = vmul.f32 %v1113_v34, %v3103_v30  ;;  %v911_v38 = vadd.f32 %v910_v37, %v218_v32  ;;  %v2858_v34 = vld [vmem:[#allocation7 + $0x138] sm:$0xff]  ;;  %v2844_v37 = vld [vmem:[#allocation7 + $0xc8] sm:$0xff] }
  0xbd   :  { %v884_v39 = vpop.f32.mrf.mxu0  ;;  %v924_v40 = vpop.f32.mrf.mxu3  ;;  %1821 = vmatpush.bf16.msrb.mxu0 %v2858_v34  ;;  %1813 = vmatpush.bf16.msra.mxu3 %v2844_v37 }
  0xbe   :  { %v1145_v42 = vmul.f32 %v1129_v36, %v3103_v30  ;;  %v885_v43 = vadd.f32 %v884_v39, %v217_v24  ;;  %v3109_v46 = vadd.f32 %v924_v40, %v911_v38 }
  0xbf   :  { %v898_v44 = vpop.f32.mrf.mxu1 }
  0xc0   :  { %v1161_v48 = vadd.f32 %v1145_v42, %v3103_v30  ;;  %v899_v49 = vadd.f32 %v898_v44, %v885_v43  ;;  %v1114_v50 = vmul.f32 0.044715, %v3109_v46  ;;  %v2835_v30 = vld [vmem:[#allocation7 + $0x80] sm:$0xff] }
  0xc1   :  { %1800 = vmatpush.bf16.msra.mxu2 %v2835_v30  ;;  %1822 = vmatpush.bf16.msrb.mxu0 %v2857_v45  ;;  %v222_v45 = vperm.slane %v3100_v51, 5 }
  0xc2   :  { %v1177_v53 = vmul.f32 0.7978846, %v1161_v48  ;;  %v1121_v54 = vmul.f32 0.044715, %v899_v49  ;;  %v1130_v56 = vmul.f32 %v1114_v50, %v3109_v46  ;;  %v1105_v20 = vmul.f32 0.5, %v899_v49 }
  0xc3   :  { %v912_v59 = vpop.f32.mrf.mxu2 }
  0xc4   :  { %v1137_v58 = vmul.f32 %v1121_v54, %v899_v49  ;;  %v1146_v60 = vmul.f32 %v1130_v56, %v3109_v46  ;;  %v913_v61 = vadd.f32 %v912_v59, %v218_v32  ;;  %2894 = vtanh.f32 %v1177_v53  ;;  %v2866_v56 = vld [vmem:[#allocation7 + $0x178] sm:$0xff] }
  0xc5   :  { %v926_v62 = vpop.f32.mrf.mxu3  ;;  %v1098_v32 = vmul.f32 0.5, %v3109_v46  ;;  %1835 = vmatpush.bf16.msrb.mxu1 %v2866_v56 }
  0xc6   :  { %v1153_v0 = vmul.f32 %v1137_v58, %v899_v49  ;;  %v1162_v1 = vadd.f32 %v1146_v60, %v3109_v46  ;;  %v927_v2 = vadd.f32 %v926_v62, %v913_v61  ;;  %v2856_v61 = vld [vmem:[#allocation7 + $0x128] sm:$0xff] }
  0xc7   :  { %1823 = vmatpush.bf16.msrb.mxu0 %v2856_v61  ;;  %v2882_v61 = vld [vmem:[#allocation7 + $0x1f8] sm:$0xff] }
  0xc8   :  { %v1169_v4 = vadd.f32 %v1153_v0, %v899_v49  ;;  %v1178_v5 = vmul.f32 0.7978846, %v1162_v1  ;;  %v1122_v6 = vmul.f32 0.044715, %v927_v2  ;;  %v1106_v39 = vmul.f32 0.5, %v927_v2  ;;  %v2843_v49 = vld [vmem:[#allocation7 + $0xc0] sm:$0xff] }
  0xc9   :  { %1814 = vmatpush.bf16.msra.mxu3 %v2843_v49  ;;  %v2865_v1 = vld [vmem:[#allocation7 + $0x170] sm:$0xff] }
  0xca   :  { %v1185_v8 = vmul.f32 0.7978846, %v1169_v4  ;;  %v1138_v9 = vmul.f32 %v1122_v6, %v927_v2  ;;  %v2895_v11 = vpop.eup %2894  ;;  %1836 = vmatpush.bf16.msrb.mxu1 %v2865_v1 }
  0xcb   :  { %v1209_v16 = vadd.f32 1.0, %v2895_v11 }
  0xcc   :  { %2896 = vtanh.f32 %v1185_v8  ;;  %v1154_v12 = vmul.f32 %v1138_v9, %v927_v2 }
  0xcd   :  { %2898 = vtanh.f32 %v1178_v5  ;;  %v1225_v25 = vmul.f32 %v1209_v16, %v1097_v15  ;;  %v2855_v5 = vld [vmem:[#allocation7 + $0x120] sm:$0xff]  ;;  %1863 = vmatpush.bf16.msrb.mxu3 %v2882_v61 }
  0xce   :  { %v1170_v14 = vadd.f32 %v1154_v12, %v927_v2  ;;  %1824 = vmatpush.bf16.msrb.mxu0 %v2855_v5  ;;  %1837 = vmatpush.bf16.msrb.mxu1 %v2864_v10 }
  0xd0   :  { %v1186_v19 = vmul.f32 0.7978846, %v1170_v14  ;;  %v2854_v14 = vld [vmem:[#allocation7 + $0x118] sm:$0xff] }
  0xd2   :  { %v2897_v22 = vpop.eup %2896  ;;  %2900 = vtanh.f32 %v1186_v19  ;;  %1825 = vmatpush.bf16.msrb.mxu0 %v2854_v14 }
  0xd3   :  { %v2899_v55 = vpop.eup %2898  ;;  %v1217_v24 = vadd.f32 1.0, %v2897_v22 }
  0xd4   :  { %v1210_v33 = vadd.f32 1.0, %v2899_v55  ;;  %v2862_v55 = vld [vmem:[#allocation7 + $0x158] sm:$0xff] }
  0xd5   :  { %v938_v23 = vpop.f32.mrf.mxu0  ;;  %v1233_v29 = vmul.f32 %v1217_v24, %v1105_v20 }
  0xd6   :  { %v939_v27 = vadd.f32 %v938_v23, %v219_v18  ;;  %v1226_v44 = vmul.f32 %v1210_v33, %v1098_v32  ;;  %1826 = vmatpush.bf16.msrb.mxu0 %v2853_v21  ;;  %v2861_v32 = vld [vmem:[#allocation7 + $0x150] sm:$0xff] }
  0xd7   :  { %v952_v28 = vpop.f32.mrf.mxu1  ;;  %v1241_v36 = vpack.c.bf16 %v1233_v29, %v1225_v25 }
  0xd8   :  { %v3118_v31 = vadd.f32 %v952_v28, %v939_v27  ;;  %v2901_v40 = vpop.eup %2900  ;;  %v2852_v27 = vld [vmem:[#allocation7 + $0x108] sm:$0xff] }
  0xd9   :  { %1773 = vmatmul.bf16.vlgmr.msra.gmra.mxu0 %v1241_v36  ;;  %v1218_v43 = vadd.f32 1.0, %v2901_v40  ;;  %v2874_v40 = vld [vmem:[#allocation7 + $0x1b8] sm:$0xff] }
  0xda   :  { %v1115_v38 = vmul.f32 0.044715, %v3118_v31  ;;  %v1099_v24 = vmul.f32 0.5, %v3118_v31  ;;  %1827 = vmatpush.bf16.msrb.mxu0 %v2852_v27  ;;  %1849 = vmatpush.bf16.msrb.mxu2 %v2874_v40 }
  0xdb   :  { %v966_v42 = vpop.f32.mrf.mxu2  ;;  %v1234_v54 = vmul.f32 %v1218_v43, %v1106_v39  ;;  %v2851_v39 = vld [vmem:[#allocation7 + $0x100] sm:$0xff] }
  0xdc   :  { %v1131_v41 = vmul.f32 %v1115_v38, %v3118_v31  ;;  %v967_v46 = vadd.f32 %v966_v42, %v220_v35 }
  0xdd   :  { %v940_v47 = vpop.f32.mrf.mxu0  ;;  %v980_v48 = vpop.f32.mrf.mxu3  ;;  %v1242_v60 = vpack.c.bf16 %v1234_v54, %v1226_v44  ;;  %v2860_v44 = vld [vmem:[#allocation7 + $0x148] sm:$0xff] }
  0xde   :  { %v1147_v50 = vmul.f32 %v1131_v41, %v3118_v31  ;;  %v941_v52 = vadd.f32 %v940_v47, %v219_v18  ;;  %v3125_v57 = vadd.f32 %v980_v48, %v967_v46  ;;  %v2863_v18 = vld [vmem:[#allocation7 + $0x160] sm:$0xff]  ;;  %1828 = vmatpush.bf16.msrb.mxu0 %v2851_v39 }
  0xdf   :  { %v954_v53 = vpop.f32.mrf.mxu1  ;;  %1787 = vmatmul.bf16.vlgmr.msra.gmra.mxu1 %v1242_v60 }
  0xe0   :  { %v1163_v58 = vadd.f32 %v1147_v50, %v3118_v31  ;;  %v955_v59 = vadd.f32 %v954_v53, %v941_v52  ;;  %v1116_v62 = vmul.f32 0.044715, %v3125_v57  ;;  %1838 = vmatpush.bf16.msrb.mxu1 %v2863_v18  ;;  %v1100_v42 = vmul.f32 0.5, %v3125_v57  ;;  %v2873_v50 = vld [vmem:[#allocation7 + $0x1b0] sm:$0xff]  ;;  %v2880_v18 = vld [vmem:[#allocation7 + $0x1e8] sm:$0xff] }
  0xe1   :  { %1850 = vmatpush.bf16.msrb.mxu2 %v2873_v50 }
  0xe2   :  { %v1179_v63 = vmul.f32 0.7978846, %v1163_v58  ;;  %v1123_v0 = vmul.f32 0.044715, %v955_v59  ;;  %v1132_v2 = vmul.f32 %v1116_v62, %v3125_v57  ;;  %v1107_v29 = vmul.f32 0.5, %v955_v59 }
  0xe3   :  { %v968_v4 = vpop.f32.mrf.mxu2 }
  0xe4   :  { %v1139_v3 = vmul.f32 %v1123_v0, %v955_v59  ;;  %v1148_v6 = vmul.f32 %v1132_v2, %v3125_v57  ;;  %v969_v7 = vadd.f32 %v968_v4, %v220_v35  ;;  %2902 = vtanh.f32 %v1179_v63  ;;  %1839 = vmatpush.bf16.msrb.mxu1 %v2862_v55 }
  0xe5   :  { %v982_v8 = vpop.f32.mrf.mxu3 }
  0xe6   :  { %v1155_v9 = vmul.f32 %v1139_v3, %v955_v59  ;;  %v1164_v11 = vadd.f32 %v1148_v6, %v3125_v57  ;;  %v983_v12 = vadd.f32 %v982_v8, %v969_v7  ;;  %v2859_v57 = vld [vmem:[#allocation7 + $0x140] sm:$0xff]  ;;  %v2872_v3 = vld [vmem:[#allocation7 + $0x1a8] sm:$0xff]  ;;  %v2881_v8 = vld [vmem:[#allocation7 + $0x1f0] sm:$0xff] }
  0xe7   :  { %1851 = vmatpush.bf16.msrb.mxu2 %v2872_v3  ;;  %1864 = vmatpush.bf16.msrb.mxu3 %v2881_v8 }
  0xe8   :  { %v1171_v13 = vadd.f32 %v1155_v9, %v955_v59  ;;  %v1180_v15 = vmul.f32 0.7978846, %v1164_v11  ;;  %v1124_v16 = vmul.f32 0.044715, %v983_v12  ;;  %1840 = vmatpush.bf16.msrb.mxu1 %v2861_v32  ;;  %v1108_v48 = vmul.f32 0.5, %v983_v12  ;;  %v2871_v11 = vld [vmem:[#allocation7 + $0x1a0] sm:$0xff] }
  0xea   :  { %v1187_v17 = vmul.f32 0.7978846, %v1171_v13  ;;  %v1140_v19 = vmul.f32 %v1124_v16, %v983_v12  ;;  %v2903_v20 = vpop.eup %2902 }
  0xeb   :  { %v1211_v25 = vadd.f32 1.0, %v2903_v20  ;;  %1852 = vmatpush.bf16.msrb.mxu2 %v2871_v11  ;;  %1865 = vmatpush.bf16.msrb.mxu3 %v2880_v18 }
  0xec   :  { %2904 = vtanh.f32 %v1187_v17  ;;  %v1156_v22 = vmul.f32 %v1140_v19, %v983_v12  ;;  %1841 = vmatpush.bf16.msrb.mxu1 %v2860_v44 }
  0xed   :  { %2906 = vtanh.f32 %v1180_v15  ;;  %v1227_v36 = vmul.f32 %v1211_v25, %v1099_v24  ;;  %v2879_v24 = vld [vmem:[#allocation7 + $0x1e0] sm:$0xff] }
  0xee   :  { %v1172_v23 = vadd.f32 %v1156_v22, %v983_v12  ;;  %v2870_v22 = vld [vmem:[#allocation7 + $0x198] sm:$0xff] }
  0xef   :  { %1853 = vmatpush.bf16.msrb.mxu2 %v2870_v22  ;;  %1866 = vmatpush.bf16.msrb.mxu3 %v2879_v24 }
  0xf0   :  { %v1188_v28 = vmul.f32 0.7978846, %v1172_v23  ;;  %1842 = vmatpush.bf16.msrb.mxu1 %v2859_v57 }
  0xf2   :  { %v2905_v30 = vpop.eup %2904  ;;  %2908 = vtanh.f32 %v1188_v28  ;;  %v2869_v28 = vld [vmem:[#allocation7 + $0x190] sm:$0xff] }
  0xf3   :  { %v2907_v33 = vpop.eup %2906  ;;  %v1219_v35 = vadd.f32 1.0, %v2905_v30  ;;  %1854 = vmatpush.bf16.msrb.mxu2 %v2869_v28  ;;  %v2878_v30 = vld [vmem:[#allocation7 + $0x1d8] sm:$0xff] }
  0xf4   :  { %v1212_v43 = vadd.f32 1.0, %v2907_v33  ;;  %v2868_v33 = vld [vmem:[#allocation7 + $0x188] sm:$0xff]  ;;  %1867 = vmatpush.bf16.msrb.mxu3 %v2878_v30 }
  0xf5   :  { %v994_v34 = vpop.f32.mrf.mxu0  ;;  %v1235_v31 = vmul.f32 %v1219_v35, %v1107_v29  ;;  %v223_v35 = vperm.slane %v3100_v51, 6 }
  0xf6   :  { %v995_v37 = vadd.f32 %v994_v34, %v221_v26  ;;  %v1228_v56 = vmul.f32 %v1212_v43, %v1100_v42 }
  0xf7   :  { %v1008_v38 = vpop.f32.mrf.mxu1  ;;  %v1243_v46 = vpack.c.bf16 %v1235_v31, %v1227_v36  ;;  %v2877_v36 = vld [vmem:[#allocation7 + $0x1d0] sm:$0xff]  ;;  %1855 = vmatpush.bf16.msrb.mxu2 %v2868_v33  ;;  %v2867_v31 = vld [vmem:[#allocation7 + $0x180] sm:$0xff] }
  0xf8   :  { %v3134_v41 = vadd.f32 %v1008_v38, %v995_v37  ;;  %v2909_v49 = vpop.eup %2908  ;;  %1868 = vmatpush.bf16.msrb.mxu3 %v2877_v36 }
  0xf9   :  { %1801 = vmatmul.bf16.vlgmr.msra.gmra.mxu2 %v1243_v46  ;;  %v1220_v54 = vadd.f32 1.0, %v2909_v49 }
  0xfa   :  { %v1117_v47 = vmul.f32 0.044715, %v3134_v41  ;;  %v1101_v38 = vmul.f32 0.5, %v3134_v41 }
  0xfb   :  { %v1022_v53 = vpop.f32.mrf.mxu2  ;;  %v1236_v1 = vmul.f32 %v1220_v54, %v1108_v48  ;;  %1856 = vmatpush.bf16.msrb.mxu2 %v2867_v31 }
  0xfc   :  { %v1133_v52 = vmul.f32 %v1117_v47, %v3134_v41  ;;  %v1023_v58 = vadd.f32 %v1022_v53, %v222_v45  ;;  %v2876_v47 = vld [vmem:[#allocation7 + $0x1c8] sm:$0xff]  ;;  %v224_v53 = vperm.slane %v3100_v51, 7 }
  0xfd   :  { %v996_v59 = vpop.f32.mrf.mxu0  ;;  %v1036_v60 = vpop.f32.mrf.mxu3  ;;  %v1244_v6 = vpack.c.bf16 %v1236_v1, %v1228_v56  ;;  %1869 = vmatpush.bf16.msrb.mxu3 %v2876_v47  ;;  %v2875_v56 = vld [vmem:[#allocation7 + $0x1c0] sm:$0xff] }
  0xfe   :  { %v1149_v62 = vmul.f32 %v1133_v52, %v3134_v41  ;;  %v997_v63 = vadd.f32 %v996_v59, %v221_v26  ;;  %v3141_v2 = vadd.f32 %v1036_v60, %v1023_v58 }
  0xff   :  { %v1010_v0 = vpop.f32.mrf.mxu1  ;;  %1815 = vmatmul.bf16.vlgmr.msra.gmra.mxu3 %v1244_v6 }
 0x100   :  { %v1165_v4 = vadd.f32 %v1149_v62, %v3134_v41  ;;  %v1011_v5 = vadd.f32 %v1010_v0, %v997_v63  ;;  %v1118_v7 = vmul.f32 0.044715, %v3141_v2  ;;  %v1102_v0 = vmul.f32 0.5, %v3141_v2 }
 0x101   :  { %1870 = vmatpush.bf16.msrb.mxu3 %v2875_v56 }
 0x102   :  { %v1125_v9 = vmul.f32 0.044715, %v1011_v5  ;;  %v1134_v10 = vmul.f32 %v1118_v7, %v3141_v2  ;;  %v1181_v12 = vmul.f32 0.7978846, %v1165_v4 }
 0x103   :  { %v1024_v14 = vpop.f32.mrf.mxu2 }
 0x104   :  { %v1141_v13 = vmul.f32 %v1125_v9, %v1011_v5  ;;  %v1150_v15 = vmul.f32 %v1134_v10, %v3141_v2  ;;  %v1025_v16 = vadd.f32 %v1024_v14, %v222_v45  ;;  %2910 = vtanh.f32 %v1181_v12 }
 0x105   :  { %v1038_v17 = vpop.f32.mrf.mxu3  ;;  %v1109_v45 = vmul.f32 0.5, %v1011_v5 }
 0x106   :  { %v1157_v19 = vmul.f32 %v1141_v13, %v1011_v5  ;;  %v1166_v20 = vadd.f32 %v1150_v15, %v3141_v2  ;;  %v1039_v21 = vadd.f32 %v1038_v17, %v1025_v16 }
 0x108   :  { %v1173_v55 = vadd.f32 %v1157_v19, %v1011_v5  ;;  %v1126_v23 = vmul.f32 0.044715, %v1039_v21  ;;  %v1182_v26 = vmul.f32 0.7978846, %v1166_v20  ;;  %v1110_v1 = vmul.f32 0.5, %v1039_v21 }
 0x10a   :  { %v1189_v25 = vmul.f32 0.7978846, %v1173_v55  ;;  %v1142_v27 = vmul.f32 %v1126_v23, %v1039_v21  ;;  %v2911_v32 = vpop.eup %2910 }
 0x10b   :  { %v1213_v39 = vadd.f32 1.0, %v2911_v32 }
 0x10c   :  { %2912 = vtanh.f32 %v1189_v25  ;;  %v1158_v29 = vmul.f32 %v1142_v27, %v1039_v21 }
 0x10d   :  { %2914 = vtanh.f32 %v1182_v26  ;;  %v1229_v50 = vmul.f32 %v1213_v39, %v1101_v38 }
 0x10e   :  { %v1174_v34 = vadd.f32 %v1158_v29, %v1039_v21 }
 0x110   :  { %v1190_v37 = vmul.f32 0.7978846, %v1174_v34 }
 0x112   :  { %v2913_v40 = vpop.eup %2912  ;;  %2916 = vtanh.f32 %v1190_v37 }
 0x113   :  { %v1221_v46 = vadd.f32 1.0, %v2913_v40  ;;  %v2915_v48 = vpop.eup %2914 }
 0x114   :  { %v1214_v57 = vadd.f32 1.0, %v2915_v48 }
 0x115   :  { %v1050_v42 = vpop.f32.mrf.mxu0  ;;  %v1237_v52 = vmul.f32 %v1221_v46, %v1109_v45 }
 0x116   :  { %v1051_v43 = vadd.f32 %v1050_v42, %v223_v35  ;;  %v1230_v7 = vmul.f32 %v1214_v57, %v1102_v0 }
 0x117   :  { %v1064_v44 = vpop.f32.mrf.mxu1  ;;  %v1245_v54 = vpack.c.bf16 %v1237_v52, %v1229_v50 }
 0x118   :  { %v1065_v49 = vadd.f32 %v1064_v44, %v1051_v43  ;;  %v2917_v58 = vpop.eup %2916 }
 0x119   :  { %1829 = vmatmul.bf16.vlgmr.msrb.gmra.mxu0 %v1245_v54  ;;  %v1222_v3 = vadd.f32 1.0, %v2917_v58 }
 0x11a   :  { %v1119_v41 = vmul.f32 0.044715, %v1065_v49  ;;  %v1103_v34 = vmul.f32 0.5, %v1065_v49 }
 0x11b   :  { %v1078_v60 = vpop.f32.mrf.mxu2  ;;  %v1238_v8 = vmul.f32 %v1222_v3, %v1110_v1 }
 0x11c   :  { %v1135_v59 = vmul.f32 %v1119_v41, %v1065_v49  ;;  %v1079_v61 = vadd.f32 %v1078_v60, %v224_v53 }
 0x11d   :  { %v1092_v62 = vpop.f32.mrf.mxu3  ;;  %v1052_v63 = vpop.f32.mrf.mxu0  ;;  %v1246_v12 = vpack.c.bf16 %v1238_v8, %v1230_v7 }
 0x11e   :  { %v1151_v4 = vmul.f32 %v1135_v59, %v1065_v49  ;;  %v1053_v5 = vadd.f32 %v1052_v63, %v223_v35  ;;  %v1093_v51 = vadd.f32 %v1092_v62, %v1079_v61 }
 0x11f   :  { %v1066_v6 = vpop.f32.mrf.mxu1  ;;  %1843 = vmatmul.bf16.vlgmr.msrb.gmra.mxu1 %v1246_v12 }
 0x120   :  { %v1167_v9 = vadd.f32 %v1151_v4, %v1065_v49  ;;  %v1067_v10 = vadd.f32 %v1066_v6, %v1053_v5  ;;  %v1120_v11 = vmul.f32 0.044715, %v1093_v51  ;;  %v1104_v43 = vmul.f32 0.5, %v1093_v51  ;;  %v2893_v49 = vld [vmem:[%s3162_s4] ss:$0 sm:$0xff] }
 0x122   :  { %v1127_v13 = vmul.f32 0.044715, %v1067_v10  ;;  %v1136_v14 = vmul.f32 %v1120_v11, %v1093_v51  ;;  %v1183_v15 = vmul.f32 0.7978846, %v1167_v9  ;;  %v1111_v35 = vmul.f32 0.5, %v1067_v10 }
 0x123   :  { %v1080_v17 = vpop.f32.mrf.mxu2 }
 0x124   :  { %v1143_v16 = vmul.f32 %v1127_v13, %v1067_v10  ;;  %v1152_v2 = vmul.f32 %v1136_v14, %v1093_v51  ;;  %v1081_v18 = vadd.f32 %v1080_v17, %v224_v53  ;;  %2918 = vtanh.f32 %v1183_v15 }
 0x125   :  { %v1094_v20 = vpop.f32.mrf.mxu3 }
 0x126   :  { %v1159_v19 = vmul.f32 %v1143_v16, %v1067_v10  ;;  %v1168_v21 = vadd.f32 %v1152_v2, %v1093_v51  ;;  %v1095_v22 = vadd.f32 %v1094_v20, %v1081_v18 }
 0x128   :  { %v1175_v55 = vadd.f32 %v1159_v19, %v1067_v10  ;;  %v1128_v23 = vmul.f32 0.044715, %v1095_v22  ;;  %v1184_v25 = vmul.f32 0.7978846, %v1168_v21  ;;  %v1112_v44 = vmul.f32 0.5, %v1095_v22 }
 0x12a   :  { %v1191_v24 = vmul.f32 0.7978846, %v1175_v55  ;;  %v1144_v26 = vmul.f32 %v1128_v23, %v1095_v22  ;;  %v2919_v28 = vpop.eup %2918 }
 0x12b   :  { %v1215_v32 = vadd.f32 1.0, %v2919_v28 }
 0x12c   :  { %2920 = vtanh.f32 %v1191_v24  ;;  %v1160_v27 = vmul.f32 %v1144_v26, %v1095_v22 }
 0x12d   :  { %2922 = vtanh.f32 %v1184_v25  ;;  %v1231_v38 = vmul.f32 %v1215_v32, %v1103_v34 }
 0x12e   :  { %v1176_v29 = vadd.f32 %v1160_v27, %v1095_v22 }
 0x130   :  { %v1192_v30 = vmul.f32 0.7978846, %v1176_v29 }
 0x132   :  { %v2921_v33 = vpop.eup %2920  ;;  %2924 = vtanh.f32 %v1192_v30 }
 0x133   :  { %v1223_v36 = vadd.f32 1.0, %v2921_v33  ;;  %v2923_v37 = vpop.eup %2922 }
 0x134   :  { %v1216_v40 = vadd.f32 1.0, %v2923_v37 }
 0x135   :  { %v1239_v39 = vmul.f32 %v1223_v36, %v1111_v35 }
 0x136   :  { %v1232_v46 = vmul.f32 %v1216_v40, %v1104_v43 }
 0x137   :  { %v1247_v31 = vpack.c.bf16 %v1239_v39, %v1231_v38 }
 0x138   :  { %v2925_v42 = vpop.eup %2924 }
 0x139   :  { %1857 = vmatmul.bf16.vlgmr.msrb.gmra.mxu2 %v1247_v31  ;;  %v1224_v45 = vadd.f32 1.0, %v2925_v42 }
 0x13b   :  { %v1240_v47 = vmul.f32 %v1224_v45, %v1112_v44 }
 0x13d   :  { %v1248_v48 = vpack.c.bf16 %v1240_v47, %v1232_v46 }
 0x13f   :  { %1871 = vmatmul.bf16.vlgmr.msrb.gmra.mxu3 %v1248_v48 }
 0x156   :  { %v1774_v50 = vpop.f32.mrf.mxu0 }
 0x157   :  { %v1775_v52 = vadd.f32 %v2893_v49, %v1774_v50 }
 0x15c   :  { %v1788_v53 = vpop.f32.mrf.mxu1 }
 0x15d   :  { %v1789_v41 = vadd.f32 %v1788_v53, %v1775_v52 }
 0x15e   :  { %v1776_v54 = vpop.f32.mrf.mxu0 }
 0x164   :  { %v1790_v56 = vpop.f32.mrf.mxu1 }
 0x17c   :  { %v1802_v57 = vpop.f32.mrf.mxu2 }
 0x17d   :  { %v1803_v1 = vadd.f32 %v1802_v57, %v1789_v41 }
 0x182   :  { %v1816_v58 = vpop.f32.mrf.mxu3 }
 0x183   :  { %v1817_v3 = vadd.f32 %v1816_v58, %v1803_v1 }
 0x184   :  { %v1804_v59 = vpop.f32.mrf.mxu2 }
 0x18a   :  { %v1818_v60 = vpop.f32.mrf.mxu3 }
 0x196   :  { %v1830_v61 = vpop.f32.mrf.mxu0 }
 0x197   :  { %v1831_v5 = vadd.f32 %v1830_v61, %v1817_v3 }
 0x19c   :  { %v1844_v62 = vpop.f32.mrf.mxu1 }
 0x19d   :  { %v1845_v51 = vadd.f32 %v1844_v62, %v1831_v5 }
 0x19e   :  { %v1832_v63 = vpop.f32.mrf.mxu0 }
 0x1a4   :  { %v1846_v0 = vpop.f32.mrf.mxu1 }
 0x1bc   :  { %v1858_v4 = vpop.f32.mrf.mxu2 }
 0x1bd   :  { %v1859_v6 = vadd.f32 %v1858_v4, %v1845_v51 }
 0x1c2   :  { %v1872_v7 = vpop.f32.mrf.mxu3 }
 0x1c3   :  { %v1873_v8 = vadd.f32 %v1872_v7, %v1859_v6 }
 0x1c4   :  { %v1860_v9 = vpop.f32.mrf.mxu2 }
 0x1c5   :  { %1910 = vst [vmem:[%s3163_s5] sm:$0xff] %v1873_v8 }
 0x1ca   :  { %v1874_v10 = vpop.f32.mrf.mxu3 }
 0x1cb   :  { %1916 = vsyncpa [#allocation3], 1 }
 0x1cc   :  { %1917 = vsyncpa [#allocation5], 1 }
 0x1cd   :  { %1918 = vsyncpa [#allocation8], 1 }

</bundles_post_ra>
